<compile_context>
chip_gen: v7x
topology: tpu7x:2x2x1
jax: 0.10.0
libtpu: 0.0.40
codegen_flags: <defaults>
</compile_context>

<pallas_src>
import jax
import jax.numpy as jnp
from jax.experimental import pallas as pl
from jax.experimental.pallas import tpu as pltpu

C_PAD = 128   # conv output channels padded to a full lane tile
O_PAD = 128   # head logits padded to a full lane tile


# --------------------------- Pallas kernels (hot path) ---------------------------

def conv_relu_pool_kernel(patch_ref, w_ref, b_ref, o_ref):
    # patch_ref: (TM, 4*K)      bf16  -- im2col patches, the 4 pool positions stacked along K
    # w_ref    : (4*K, 4*C_PAD) bf16  -- block-diagonal conv weight (one block per pool position)
    # b_ref    : (1, C_PAD)     f32
    # o_ref    : (TM, C_PAD)    bf16  -- fused conv + bias + ReLU + maxpool output (lane dense)
    cpad = o_ref.shape[-1]
    val = jnp.dot(patch_ref[...], w_ref[...],
                  preferred_element_type=jnp.float32)          # (TM, 4*C_PAD) in f32
    # max over the 4 pool positions: static, 128-lane-aligned column groups
    m = jnp.maximum(
        jnp.maximum(val[:, 0 * cpad:1 * cpad], val[:, 1 * cpad:2 * cpad]),
        jnp.maximum(val[:, 2 * cpad:3 * cpad], val[:, 3 * cpad:4 * cpad]),
    )
    # bias is identical across pool positions and ReLU is monotone, so bias/ReLU after max is exact
    o_ref[...] = jnp.maximum(m + b_ref[...], 0.0).astype(o_ref.dtype)


def linear_kernel(x_ref, w_ref, b_ref, o_ref):
    # x_ref: (TN, F) bf16   w_ref: (F, O_PAD) bf16   b_ref: (1, O_PAD) f32   o_ref: (TN, O_PAD) f32
    o_ref[...] = (
        jnp.dot(x_ref[...], w_ref[...], preferred_element_type=jnp.float32) + b_ref[...]
    ).astype(o_ref.dtype)


# --------------------------- pallas_call wrappers ---------------------------

def conv_relu_pool(patches, w_bd, b_pad, *, tm):
    mpad, k4 = patches.shape
    c4 = w_bd.shape[1]
    cpad = b_pad.shape[1]
    flops = 2 * mpad * k4 * c4
    bytes_accessed = (mpad * k4 * 2) + (k4 * c4 * 2) + (cpad * 4) + (mpad * cpad * 2)
    return pl.pallas_call(
        conv_relu_pool_kernel,
        out_shape=jax.ShapeDtypeStruct((mpad, cpad), jnp.bfloat16),
        grid=(mpad // tm,),
        in_specs=[
            pl.BlockSpec((tm, k4), lambda i: (i, 0)),
            pl.BlockSpec((k4, c4), lambda i: (0, 0)),      # constant block index -> stays resident
            pl.BlockSpec((1, cpad), lambda i: (0, 0)),
        ],
        out_specs=pl.BlockSpec((tm, cpad), lambda i: (i, 0)),
        compiler_params=pltpu.CompilerParams(dimension_semantics=("parallel",)),
        cost_estimate=pl.CostEstimate(flops=flops, transcendentals=0,
                                      bytes_accessed=bytes_accessed),
    )(patches, w_bd, b_pad)


def linear(x, w, b_pad, *, tn):
    npad, f = x.shape
    opad = w.shape[1]
    flops = 2 * npad * f * opad
    bytes_accessed = (npad * f * 2) + (f * opad * 2) + (opad * 4) + (npad * opad * 4)
    return pl.pallas_call(
        linear_kernel,
        out_shape=jax.ShapeDtypeStruct((npad, opad), jnp.float32),
        grid=(npad // tn,),
        in_specs=[
            pl.BlockSpec((tn, f), lambda i: (i, 0)),
            pl.BlockSpec((f, opad), lambda i: (0, 0)),
            pl.BlockSpec((1, opad), lambda i: (0, 0)),
        ],
        out_specs=pl.BlockSpec((tn, opad), lambda i: (i, 0)),
        compiler_params=pltpu.CompilerParams(dimension_semantics=("parallel",)),
        cost_estimate=pl.CostEstimate(flops=flops, transcendentals=0,
                                      bytes_accessed=bytes_accessed),
    )(x, w, b_pad)


# --------------------------- one-time param preparation (outside jit) ---------------------------

def prepare_params(params, cpad=C_PAD, opad=O_PAD):
    """PyTorch-layout params -> Pallas-friendly padded/permuted bf16 weights (done once)."""
    w_conv = params["w_conv"]        # (Cout, Cin, 3, 3)  OIHW
    b_conv = params["b_conv"]        # (Cout,)
    w_head = params["w_head"]        # (O, Cout*Ho*Wo)    nn.Linear weight, NCHW flatten order
    b_head = params["b_head"]        # (O,)

    cout, cin = w_conv.shape[0], w_conv.shape[1]
    num_classes, f_dim = w_head.shape
    s = f_dim // cout                # Ho*Wo
    k = 9 * cin

    # conv weight as matmul matrix in (kh, kw, ci) x co order, channel-padded to cpad
    w_mat = jnp.transpose(w_conv, (2, 3, 1, 0)).reshape(k, cout)
    w_pad = jnp.zeros((k, cpad), jnp.float32).at[:, :cout].set(w_mat)
    # block-diagonal over the 4 maxpool positions -> (4K, 4*cpad)
    w_bd = jnp.einsum("pq,kc->pkqc", jnp.eye(4, dtype=jnp.float32), w_pad)
    w_bd = w_bd.reshape(4 * k, 4 * cpad).astype(jnp.bfloat16)

    b_conv_pad = jnp.zeros((1, cpad), jnp.float32).at[0, :cout].set(b_conv)

    # head weight: fold nn.Flatten's (c, ho, wo) ordering into a (s, c_pad) x o_pad matrix so the
    # pooled activations can be consumed in their natural (ho, wo, c_pad) layout (no transpose).
    w_h = w_head.reshape(num_classes, cout, s)          # [o, c, s]
    w_h = jnp.transpose(w_h, (2, 1, 0))                 # [s, c, o]
    w_h = jnp.pad(w_h, ((0, 0), (0, cpad - cout), (0, opad - num_classes)))
    w_head_mat = w_h.reshape(s * cpad, opad).astype(jnp.bfloat16)

    b_head_pad = jnp.zeros((1, opad), jnp.float32).at[0, :num_classes].set(b_head)

    return {"w_conv": w_bd, "b_conv": b_conv_pad, "w_head": w_head_mat, "b_head": b_head_pad}


# --------------------------- model forward ---------------------------

def cifar10_model_forward(x_nchw, prep, num_classes):
    n, cin, h, w = x_nchw.shape
    ho, wo = h // 2, w // 2
    k = 9 * cin
    cpad = prep["b_conv"].shape[1]

    # ---- backbone: Conv2d(3x3, pad=1) + ReLU + MaxPool(2,2), fused in one Pallas kernel ----
    x = jnp.transpose(x_nchw, (0, 2, 3, 1)).astype(jnp.bfloat16)      # NHWC, bf16
    xp = jnp.pad(x, ((0, 0), (1, 1), (1, 1), (0, 0)))
    pat = jnp.stack(
        [xp[:, kh:kh + h, kw:kw + w, :] for kh in range(3) for kw in range(3)], axis=3
    ).reshape(n, h, w, k)                                             # (N,H,W,9*Cin), (kh,kw,ci)
    # group the 4 maxpool positions along the K axis: (M, 4*K), M = N*Ho*Wo
    pat4 = (pat.reshape(n, ho, 2, wo, 2, k)
               .transpose(0, 1, 3, 2, 4, 5)
               .reshape(n * ho * wo, 4 * k))
    m = n * ho * wo
    tm = min(1024, ((m + 7) // 8) * 8)
    mpad = ((m + tm - 1) // tm) * tm
    if mpad > m:
        pat4 = jnp.pad(pat4, ((0, mpad - m), (0, 0)))

    pooled = conv_relu_pool(pat4, prep["w_conv"], prep["b_conv"], tm=tm)   # (Mpad, C_PAD) bf16

    # ---- adapter: Flatten (channel permutation already folded into the head weight) ----
    f_pad = ho * wo * cpad
    feat = pooled[:m].reshape(n, f_pad)                                    # (N, Ho*Wo*C_PAD) bf16

    # ---- head: Linear ----
    tn = min(256, ((n + 7) // 8) * 8)
    while tn > 8 and tn * f_pad * 2 * 2 > (4 << 20):   # keep double-buffered block < ~4 MiB
        tn //= 2
    npad = ((n + tn - 1) // tn) * tn
    if npad > n:
        feat = jnp.pad(feat, ((0, npad - n), (0, 0)))

    logits = linear(feat, prep["w_head"], prep["b_head"], tn=tn)           # (Npad, O_PAD) f32
    return logits[:n, :num_classes]


# --------------------------- pure-JAX reference for verification ---------------------------

def reference_forward(x_nchw, params):
    conv = jax.lax.conv_general_dilated(
        x_nchw, params["w_conv"], window_strides=(1, 1),
        padding=((1, 1), (1, 1)),
        dimension_numbers=("NCHW", "OIHW", "NCHW"),
    ) + params["b_conv"][None, :, None, None]
    r = jnp.maximum(conv, 0.0)
    pooled = jax.lax.reduce_window(
        r, -jnp.inf, jax.lax.max, (1, 1, 2, 2), (1, 1, 2, 2), "VALID"
    )
    feat = pooled.reshape(x_nchw.shape[0], -1)
    return feat @ params["w_head"].T + params["b_head"]


if __name__ == "__main__":
    N, Cin, H, W = 2, 3, 16, 16
    Cout, num_classes = 8, 10
    F_dim = Cout * (H // 2) * (W // 2)

    key = jax.random.PRNGKey(0)
    k1, k2, k3, k4, k5 = jax.random.split(key, 5)
    x = jax.random.normal(k1, (N, Cin, H, W), jnp.float32)
    params = {
        "w_conv": 0.1 * jax.random.normal(k2, (Cout, Cin, 3, 3), jnp.float32),
        "b_conv": 0.1 * jax.random.normal(k3, (Cout,), jnp.float32),
        "w_head": 0.05 * jax.random.normal(k4, (num_classes, F_dim), jnp.float32),
        "b_head": 0.05 * jax.random.normal(k5, (num_classes,), jnp.float32),
    }

    prep = prepare_params(params)                       # one-time, outside jit
    fwd = jax.jit(cifar10_model_forward, static_argnames=("num_classes",))
    out = fwd(x, prep, num_classes=num_classes)
    out = jax.block_until_ready(out)

    ref = reference_forward(x, params)
    assert out.shape == (N, num_classes), out.shape
    # bf16 activations/weights -> compare with bf16-appropriate tolerance
    if not jnp.allclose(out, ref, atol=3e-2, rtol=3e-2):
        raise AssertionError("Pallas output does not match JAX reference")
    print("KERNEL_OK")
</pallas_src>

<mosaic_0001>
module attributes {stable_mosaic.version = 11 : i64} {
  func.func @conv_relu_pool_kernel(%arg0: i32, %arg1: memref<128x108xbf16, #tpu.memory_space<vmem>>, %arg2: memref<108x512xbf16, #tpu.memory_space<vmem>>, %arg3: memref<1x128xf32, #tpu.memory_space<vmem>>, %arg4: memref<128x128xbf16, #tpu.memory_space<vmem>>) attributes {dimension_semantics = [#tpu.dimension_semantics<parallel>], iteration_bounds = array<i64: 1>, scalar_prefetch = 0 : i64, scratch_operands = 0 : i64, tpu.core_type = #tpu.core_type<tc>, window_params = [{transform_indices = @transform_0, window_bounds = array<i64: 128, 108>}, {pipeline_mode = #tpu.pipeline_mode<synchronous>, transform_indices = @transform_1, window_bounds = array<i64: 108, 512>}, {pipeline_mode = #tpu.pipeline_mode<synchronous>, transform_indices = @transform_2, window_bounds = array<i64: 1, 128>}, {transform_indices = @transform_3, window_bounds = array<i64: 128, 128>}]} {
    %c0 = arith.constant 0 : index
    %c0_0 = arith.constant 0 : index
    %0 = vector.load %arg1[%c0, %c0_0] : memref<128x108xbf16, #tpu.memory_space<vmem>>, vector<128x108xbf16>
    %c0_1 = arith.constant 0 : index
    %c0_2 = arith.constant 0 : index
    %1 = vector.load %arg2[%c0_1, %c0_2] : memref<108x512xbf16, #tpu.memory_space<vmem>>, vector<108x512xbf16>
    %cst = arith.constant dense<0.000000e+00> : vector<128x512xf32>
    %2 = tpu.matmul %0, %1, %cst {dimension_numbers = #tpu.dot_dimension_numbers<[1], [0], [0], [1], [0, 0, 1, 1], [], []>} : vector<128x108xbf16>, vector<108x512xbf16>, vector<128x512xf32> -> vector<128x512xf32>
    %3 = vector.extract_strided_slice %2 {offsets = [0, 0], sizes = [128, 128], strides = [1, 1]} : vector<128x512xf32> to vector<128x128xf32>
    %4 = vector.extract_strided_slice %2 {offsets = [0, 128], sizes = [128, 128], strides = [1, 1]} : vector<128x512xf32> to vector<128x128xf32>
    %5 = arith.maximumf %3, %4 : vector<128x128xf32>
    %6 = vector.extract_strided_slice %2 {offsets = [0, 256], sizes = [128, 128], strides = [1, 1]} : vector<128x512xf32> to vector<128x128xf32>
    %7 = vector.extract_strided_slice %2 {offsets = [0, 384], sizes = [128, 128], strides = [1, 1]} : vector<128x512xf32> to vector<128x128xf32>
    %8 = arith.maximumf %6, %7 : vector<128x128xf32>
    %9 = arith.maximumf %5, %8 : vector<128x128xf32>
    %c0_3 = arith.constant 0 : index
    %c0_4 = arith.constant 0 : index
    %10 = vector.load %arg3[%c0_3, %c0_4] : memref<1x128xf32, #tpu.memory_space<vmem>>, vector<1x128xf32>
    %11 = vector.broadcast %10 : vector<1x128xf32> to vector<128x128xf32>
    %12 = arith.addf %9, %11 : vector<128x128xf32>
    %cst_5 = arith.constant 0.000000e+00 : f32
    %13 = vector.broadcast %cst_5 : f32 to vector<128x128xf32>
    %14 = arith.maximumf %12, %13 : vector<128x128xf32>
    %15 = arith.truncf %14 : vector<128x128xf32> to vector<128x128xbf16>
    %c0_6 = arith.constant 0 : index
    %c0_7 = arith.constant 0 : index
    %16 = vector.load %arg4[%c0_6, %c0_7] : memref<128x128xbf16, #tpu.memory_space<vmem>>, vector<128x128xbf16>
    tpu.vector_store %arg4[%c0_6, %c0_7], %15 {strides = array<i32>} : memref<128x128xbf16, #tpu.memory_space<vmem>>, vector<128x128xbf16>,
    return
  }
  func.func @transform_0(%arg0: i32) -> (i32, i32) {
    %c0_i32 = arith.constant 0 : i32
    %c0_i32_0 = arith.constant 0 : i32
    return %arg0, %c0_i32 : i32, i32
  }
  func.func @transform_1(%arg0: i32) -> (i32, i32) {
    %c0_i32 = arith.constant 0 : i32
    %c0_i32_0 = arith.constant 0 : i32
    %c0_i32_1 = arith.constant 0 : i32
    return %c0_i32, %c0_i32_0 : i32, i32
  }
  func.func @transform_2(%arg0: i32) -> (i32, i32) {
    %c0_i32 = arith.constant 0 : i32
    %c0_i32_0 = arith.constant 0 : i32
    %c0_i32_1 = arith.constant 0 : i32
    return %c0_i32, %c0_i32_0 : i32, i32
  }
  func.func @transform_3(%arg0: i32) -> (i32, i32) {
    %c0_i32 = arith.constant 0 : i32
    %c0_i32_0 = arith.constant 0 : i32
    return %arg0, %c0_i32 : i32, i32
  }
}

module attributes {stable_mosaic.version = 11 : i64} {
  func.func @linear_kernel(%arg0: i32, %arg1: memref<8x8192xbf16, #tpu.memory_space<vmem>>, %arg2: memref<8192x128xbf16, #tpu.memory_space<vmem>>, %arg3: memref<1x128xf32, #tpu.memory_space<vmem>>, %arg4: memref<8x128xf32, #tpu.memory_space<vmem>>) attributes {dimension_semantics = [#tpu.dimension_semantics<parallel>], iteration_bounds = array<i64: 1>, scalar_prefetch = 0 : i64, scratch_operands = 0 : i64, tpu.core_type = #tpu.core_type<tc>, window_params = [{transform_indices = @transform_0, window_bounds = array<i64: 8, 8192>}, {pipeline_mode = #tpu.pipeline_mode<synchronous>, transform_indices = @transform_1, window_bounds = array<i64: 8192, 128>}, {pipeline_mode = #tpu.pipeline_mode<synchronous>, transform_indices = @transform_2, window_bounds = array<i64: 1, 128>}, {transform_indices = @transform_3, window_bounds = array<i64: 8, 128>}]} {
    %c0 = arith.constant 0 : index
    %c0_0 = arith.constant 0 : index
    %0 = vector.load %arg1[%c0, %c0_0] : memref<8x8192xbf16, #tpu.memory_space<vmem>>, vector<8x8192xbf16>
    %c0_1 = arith.constant 0 : index
    %c0_2 = arith.constant 0 : index
    %1 = vector.load %arg2[%c0_1, %c0_2] : memref<8192x128xbf16, #tpu.memory_space<vmem>>, vector<8192x128xbf16>
    %cst = arith.constant dense<0.000000e+00> : vector<8x128xf32>
    %2 = tpu.matmul %0, %1, %cst {dimension_numbers = #tpu.dot_dimension_numbers<[1], [0], [0], [1], [0, 0, 1, 1], [], []>} : vector<8x8192xbf16>, vector<8192x128xbf16>, vector<8x128xf32> -> vector<8x128xf32>
    %c0_3 = arith.constant 0 : index
    %c0_4 = arith.constant 0 : index
    %3 = vector.load %arg3[%c0_3, %c0_4] : memref<1x128xf32, #tpu.memory_space<vmem>>, vector<1x128xf32>
    %4 = vector.broadcast %3 : vector<1x128xf32> to vector<8x128xf32>
    %5 = arith.addf %2, %4 : vector<8x128xf32>
    %c0_5 = arith.constant 0 : index
    %c0_6 = arith.constant 0 : index
    %6 = vector.load %arg4[%c0_5, %c0_6] : memref<8x128xf32, #tpu.memory_space<vmem>>, vector<8x128xf32>
    tpu.vector_store %arg4[%c0_5, %c0_6], %5 {strides = array<i32>} : memref<8x128xf32, #tpu.memory_space<vmem>>, vector<8x128xf32>,
    return
  }
  func.func @transform_0(%arg0: i32) -> (i32, i32) {
    %c0_i32 = arith.constant 0 : i32
    %c0_i32_0 = arith.constant 0 : i32
    return %arg0, %c0_i32 : i32, i32
  }
  func.func @transform_1(%arg0: i32) -> (i32, i32) {
    %c0_i32 = arith.constant 0 : i32
    %c0_i32_0 = arith.constant 0 : i32
    %c0_i32_1 = arith.constant 0 : i32
    return %c0_i32, %c0_i32_0 : i32, i32
  }
  func.func @transform_2(%arg0: i32) -> (i32, i32) {
    %c0_i32 = arith.constant 0 : i32
    %c0_i32_0 = arith.constant 0 : i32
    %c0_i32_1 = arith.constant 0 : i32
    return %c0_i32, %c0_i32_0 : i32, i32
  }
  func.func @transform_3(%arg0: i32) -> (i32, i32) {
    %c0_i32 = arith.constant 0 : i32
    %c0_i32_0 = arith.constant 0 : i32
    return %arg0, %c0_i32 : i32, i32
  }
}

</mosaic_0001>

<bundles_post_ra>
// kernel: cifar10_model_forward.2
= control target key start
LH: loop header
LB: loop body
LE: loop exit
PB: predicated region body
PF: predicated region fallthrough
CT: control target
= control target key end

     0   :  { %v855_v1 = vmov 0   ;;  %vm260_vm0 = vcmask 1045504   ;;  %vm235_vm1 = vcmask 883712   ;;  %s1061_s1 = inlined_call_operand.vmem [shape: bf16[108,512], index: 1, kind: input, shape index: {}]   ;;  %s1062_s0 = inlined_call_operand.vmem [shape: bf16[128,108], index: 0, kind: input, shape index: {}]   ;;  %s1063_s2 = inlined_call_operand.vmem [shape: f32[1,128], index: 2, kind: input, shape index: {}]   ;;  %s1064_s3 = inlined_call_operand.vmem [shape: bf16[128,128], index: 3, kind: output, shape index: {}]  }
   0x1   :  { %v805_v0 = vld [vmem:[%s1061_s1 + $0x4] ss:$16 sps:$4 sm:$0xff]   ;;  %305 = vmatprep.mubr.bf16.mxu0 %v855_v1  ;;  %418 = vmatprep.mubr.bf16.mxu1 %v855_v1  ;;  %v807_v2 = vld [vmem:[%s1061_s1 + $0xc] ss:$16 sps:$4 sm:$0xff]   ;;  %v809_v3 = vld [vmem:[%s1061_s1] ss:$16 sps:$4 sm:$0xff]  }
   0x2   :  { %273 = vmatprep.subr.bf16.mxu0 %v805_v0  ;;  %v810_v4 = vld [vmem:[%s1061_s1 + $0x8] ss:$16 sps:$4 sm:$0xff]   ;;  %386 = vmatprep.subr.bf16.mxu1 %v807_v2  ;;  %v811_v5 = vld [vmem:[%s1061_s1 + $0x24] ss:$16 sps:$4 sm:$0xff]   ;;  %v813_v6 = vld [vmem:[%s1061_s1 + $0x2c] ss:$16 sps:$4 sm:$0xff]  }
   0x3   :  { %274 = vmatpush1.bf16.msra.mxu0 %v809_v3  ;;  %387 = vmatpush1.bf16.msra.mxu1 %v810_v4  ;;  %v815_v7 = vld [vmem:[%s1061_s1 + $0x20] ss:$16 sps:$4 sm:$0xff]   ;;  %v816_v8 = vld [vmem:[%s1061_s1 + $0x28] ss:$16 sps:$4 sm:$0xff]   ;;  %v817_v9 = vld [vmem:[%s1061_s1 + $0x44] ss:$16 sps:$4 sm:$0xff]  }
   0x4   :  { %275 = vmatprep.subr.bf16.mxu0 %v811_v5  ;;  %388 = vmatprep.subr.bf16.mxu1 %v813_v6  ;;  %v819_v10 = vld [vmem:[%s1061_s1 + $0x4c] ss:$16 sps:$4 sm:$0xff]   ;;  %v821_v11 = vld [vmem:[%s1061_s1 + $0x40] ss:$16 sps:$4 sm:$0xff]   ;;  %v822_v12 = vld [vmem:[%s1061_s1 + $0x48] ss:$16 sps:$4 sm:$0xff]  }
   0x5   :  { %v823_v13 = vld [vmem:[%s1061_s1 + $0x64] ss:$16 sps:$4 sm:$0xff]   ;;  %v825_v14 = vld [vmem:[%s1061_s1 + $0x6c] ss:$16 sps:$4 sm:$0xff]   ;;  %v827_v15 = vld [vmem:[%s1061_s1 + $0x60] ss:$16 sps:$4 sm:$0xff]  }
   0x6   :  { %v828_v16 = vld [vmem:[%s1061_s1 + $0x68] ss:$16 sps:$4 sm:$0xff]   ;;  %v829_v17 = vld [vmem:[%s1061_s1 + $0x84] ss:$16 sps:$4 sm:$0xff]   ;;  %v831_v18 = vld [vmem:[%s1061_s1 + $0x8c] ss:$16 sps:$4 sm:$0xff]  }
   0x7   :  { %276 = vmatpush1.bf16.msra.mxu0 %v815_v7  ;;  %389 = vmatpush1.bf16.msra.mxu1 %v816_v8  ;;  %v833_v19 = vld [vmem:[%s1061_s1 + $0x80] ss:$16 sps:$4 sm:$0xff]   ;;  %v834_v20 = vld [vmem:[%s1061_s1 + $0x88] ss:$16 sps:$4 sm:$0xff]   ;;  %v835_v21 = vld [vmem:[%s1061_s1 + $0xa4] ss:$16 sps:$4 sm:$0xff]  }
   0x8   :  { %277 = vmatprep.subr.bf16.mxu0 %v817_v9  ;;  %390 = vmatprep.subr.bf16.mxu1 %v819_v10  ;;  %v837_v22 = vld [vmem:[%s1061_s1 + $0xac] ss:$16 sps:$4 sm:$0xff]   ;;  %v839_v23 = vld [vmem:[%s1061_s1 + $0xa0] ss:$16 sps:$4 sm:$0xff]   ;;  %v840_v28 = vld [vmem:[%s1061_s1 + $0xa8] ss:$16 sps:$4 sm:$0xff]  }
   0x9   :  { %v841_v24 = vld [vmem:[%s1061_s1 + $0xc4] ss:$16 sps:$4 sm:$0x3f]   ;;  %v843_v25 = vld [vmem:[%s1061_s1 + $0xcc] ss:$16 sps:$4 sm:$0x3f]  }
   0xa   :  { %v845_v26 = vld [vmem:[%s1061_s1 + $0xc0] ss:$16 sps:$4 sm:$0x3f]   ;;  %v846_v27 = vld [vmem:[%s1061_s1 + $0xc8] ss:$16 sps:$4 sm:$0x3f]  }
   0xb   :  { %278 = vmatpush1.bf16.msra.mxu0 %v821_v11  ;;  %391 = vmatpush1.bf16.msra.mxu1 %v822_v12  ;;  %v262_v29 = vsel %vm260_vm0, %v845_v26, 0  ;;  %v268_v30 = vsel %vm260_vm0, %v846_v27, 0  ;;  %v847_v31 = vld [vmem:[%s1062_s0] sm:$0xff]   ;;  %v848_v32 = vld [vmem:[%s1062_s0 + $0x8] sm:$0xff]   ;;  %v849_v33 = vld [vmem:[%s1062_s0 + $0x10] sm:$0xff]  }
   0xc   :  { %279 = vmatprep.subr.bf16.mxu0 %v823_v13  ;;  %392 = vmatprep.subr.bf16.mxu1 %v825_v14  ;;  %v850_v34 = vld [vmem:[%s1062_s0 + $0x18] sm:$0xff]   ;;  %v851_v35 = vld [vmem:[%s1062_s0 + $0x20] sm:$0xff]   ;;  %v852_v36 = vld [vmem:[%s1062_s0 + $0x28] sm:$0xff]  }
   0xd   :  { %v853_v37 = vld [vmem:[%s1062_s0 + $0x30] sm:$0xff]   ;;  %v854_v38 = vld [vmem:[%s1062_s0 + $0x38] sm:$0xff]   ;;  %v1019_v47 = vld [vmem:[%s1063_s2] ss:$0 sm:$0xff] }
   0xf   :  { %280 = vmatpush1.bf16.msra.mxu0 %v827_v15  ;;  %393 = vmatpush1.bf16.msra.mxu1 %v828_v16 }
  0x10   :  { %281 = vmatprep.subr.bf16.mxu0 %v829_v17  ;;  %394 = vmatprep.subr.bf16.mxu1 %v831_v18 }
  0x13   :  { %282 = vmatpush1.bf16.msra.mxu0 %v833_v19  ;;  %395 = vmatpush1.bf16.msra.mxu1 %v834_v20 }
  0x14   :  { %283 = vmatprep.subr.bf16.mxu0 %v835_v21  ;;  %396 = vmatprep.subr.bf16.mxu1 %v837_v22 }
  0x17   :  { %284 = vmatpush1.bf16.msra.mxu0 %v839_v23  ;;  %397 = vmatpush1.bf16.msra.mxu1 %v840_v28 }
  0x18   :  { %706 = vmatprep.subr.msk.bf16.mxu0 %vm260_vm0, %v841_v24  ;;  %715 = vmatprep.subr.msk.bf16.mxu1 %vm260_vm0, %v843_v25 }
  0x1b   :  { %286 = vmatpush1.bf16.msra.mxu0 %v262_v29  ;;  %399 = vmatpush1.bf16.msra.mxu1 %v268_v30 }
  0x1e   :  { %707 = vmatmul.mubr.msk.bf16.vlgmr.msra.gmra.mrb[0].mxu0 %vm235_vm1, %v847_v31  ;;  %716 = vmatmul.mubr.msk.bf16.vlgmr.msra.gmra.mrb[0].mxu1 %vm235_vm1, %v847_v31 }
  0x1f   :  { %315 = vmatprep.mubr.bf16.mxu0 %v855_v1  ;;  %428 = vmatprep.mubr.bf16.mxu1 %v855_v1 }
  0x26   :  { %708 = vmatmul.mubr.msk.bf16.gmra.mrb[4].mxu0 %vm235_vm1, %v848_v32  ;;  %717 = vmatmul.mubr.msk.bf16.gmra.mrb[4].mxu1 %vm235_vm1, %v848_v32 }
  0x27   :  { %325 = vmatprep.mubr.bf16.mxu0 %v855_v1  ;;  %438 = vmatprep.mubr.bf16.mxu1 %v855_v1 }
  0x2e   :  { %709 = vmatmul.mubr.msk.bf16.gmra.mrb[8].mxu0 %vm235_vm1, %v849_v33  ;;  %718 = vmatmul.mubr.msk.bf16.gmra.mrb[8].mxu1 %vm235_vm1, %v849_v33 }
  0x2f   :  { %335 = vmatprep.mubr.bf16.mxu0 %v855_v1  ;;  %448 = vmatprep.mubr.bf16.mxu1 %v855_v1 }
  0x36   :  { %710 = vmatmul.mubr.msk.bf16.gmra.mrb[12].mxu0 %vm235_vm1, %v850_v34  ;;  %719 = vmatmul.mubr.msk.bf16.gmra.mrb[12].mxu1 %vm235_vm1, %v850_v34 }
  0x37   :  { %345 = vmatprep.mubr.bf16.mxu0 %v855_v1  ;;  %458 = vmatprep.mubr.bf16.mxu1 %v855_v1 }
  0x3e   :  { %711 = vmatmul.mubr.msk.bf16.gmra.mrb[16].mxu0 %vm235_vm1, %v851_v35  ;;  %720 = vmatmul.mubr.msk.bf16.gmra.mrb[16].mxu1 %vm235_vm1, %v851_v35 }
  0x3f   :  { %355 = vmatprep.mubr.bf16.mxu0 %v855_v1  ;;  %468 = vmatprep.mubr.bf16.mxu1 %v855_v1 }
  0x46   :  { %712 = vmatmul.mubr.msk.bf16.gmra.mrb[20].mxu0 %vm235_vm1, %v852_v36  ;;  %721 = vmatmul.mubr.msk.bf16.gmra.mrb[20].mxu1 %vm235_vm1, %v852_v36 }
  0x47   :  { %365 = vmatprep.mubr.bf16.mxu0 %v855_v1  ;;  %478 = vmatprep.mubr.bf16.mxu1 %v855_v1 }
  0x4e   :  { %713 = vmatmul.mubr.msk.bf16.gmra.mrb[24].mxu0 %vm235_vm1, %v853_v37  ;;  %722 = vmatmul.mubr.msk.bf16.gmra.mrb[24].mxu1 %vm235_vm1, %v853_v37 }
  0x4f   :  { %375 = vmatprep.mubr.bf16.mxu0 %v855_v1  ;;  %488 = vmatprep.mubr.bf16.mxu1 %v855_v1 }
  0x56   :  { %714 = vmatmul.mubr.msk.bf16.gmra.mrb[28].mxu0 %vm235_vm1, %v854_v38  ;;  %723 = vmatmul.mubr.msk.bf16.gmra.mrb[28].mxu1 %vm235_vm1, %v854_v38 }
  0xf1   :  { %v307_v39 = vpop.f32.mrb[0].mxu0  ;;  %v420_v40 = vpop.f32.mrb[0].mxu1 }
  0xf2   :  { %v309_v41 = vpop.f32.mrb[1].mxu0  ;;  %v422_v42 = vpop.f32.mrb[1].mxu1 }
  0xf3   :  { %v499_v43 = vmax.f32 %v307_v39, %v309_v41  ;;  %v515_v44 = vmax.f32 %v420_v40, %v422_v42  ;;  %v311_v45 = vpop.f32.mrb[2].mxu0  ;;  %v424_v46 = vpop.f32.mrb[2].mxu1 }
  0xf4   :  { %v313_v48 = vpop.f32.mrb[3].mxu0  ;;  %v426_v49 = vpop.f32.mrb[3].mxu1 }
  0xf5   :  { %v531_v50 = vmax.f32 %v499_v43, %v515_v44  ;;  %v500_v51 = vmax.f32 %v311_v45, %v313_v48  ;;  %v516_v52 = vmax.f32 %v424_v46, %v426_v49 }
  0xf7   :  { %v554_v53 = vadd.f32 %v1019_v47, %v531_v50  ;;  %v532_v54 = vmax.f32 %v500_v51, %v516_v52 }
  0xf9   :  { %v555_v55 = vadd.f32 %v1019_v47, %v532_v54  ;;  %v317_v56 = vpop.f32.mrb[4].mxu0  ;;  %v430_v57 = vpop.f32.mrb[4].mxu1  ;;  %v570_v60 = vmax.f32 %v554_v53, 0.0 }
  0xfa   :  { %v319_v58 = vpop.f32.mrb[5].mxu0  ;;  %v432_v59 = vpop.f32.mrb[5].mxu1 }
  0xfb   :  { %v571_v61 = vmax.f32 %v555_v55, 0.0  ;;  %v501_v62 = vmax.f32 %v317_v56, %v319_v58  ;;  %v517_v63 = vmax.f32 %v430_v57, %v432_v59  ;;  %v321_v0 = vpop.f32.mrb[6].mxu0  ;;  %v434_v1 = vpop.f32.mrb[6].mxu1 }
  0xfc   :  { %v323_v2 = vpop.f32.mrb[7].mxu0  ;;  %v436_v3 = vpop.f32.mrb[7].mxu1 }
  0xfd   :  { %v760_v4 = vpack.c.bf16 %v571_v61, %v570_v60  ;;  %v533_v5 = vmax.f32 %v501_v62, %v517_v63  ;;  %v502_v6 = vmax.f32 %v321_v0, %v323_v2  ;;  %v518_v7 = vmax.f32 %v434_v1, %v436_v3 }
  0xff   :  { %761 = vst [vmem:[%s1064_s3] sm:$0xff] %v760_v4   ;;  %v556_v8 = vadd.f32 %v1019_v47, %v533_v5  ;;  %v534_v9 = vmax.f32 %v502_v6, %v518_v7 }
 0x101   :  { %v557_v10 = vadd.f32 %v1019_v47, %v534_v9  ;;  %v327_v11 = vpop.f32.mrb[8].mxu0  ;;  %v440_v12 = vpop.f32.mrb[8].mxu1  ;;  %v572_v15 = vmax.f32 %v556_v8, 0.0 }
 0x102   :  { %v329_v13 = vpop.f32.mrb[9].mxu0  ;;  %v442_v14 = vpop.f32.mrb[9].mxu1 }
 0x103   :  { %v573_v16 = vmax.f32 %v557_v10, 0.0  ;;  %v503_v17 = vmax.f32 %v327_v11, %v329_v13  ;;  %v519_v18 = vmax.f32 %v440_v12, %v442_v14  ;;  %v331_v19 = vpop.f32.mrb[10].mxu0  ;;  %v444_v20 = vpop.f32.mrb[10].mxu1 }
 0x104   :  { %v333_v21 = vpop.f32.mrb[11].mxu0  ;;  %v446_v22 = vpop.f32.mrb[11].mxu1 }
 0x105   :  { %v765_v23 = vpack.c.bf16 %v573_v16, %v572_v15  ;;  %v535_v24 = vmax.f32 %v503_v17, %v519_v18  ;;  %v504_v25 = vmax.f32 %v331_v19, %v333_v21  ;;  %v520_v26 = vmax.f32 %v444_v20, %v446_v22 }
 0x107   :  { %797 = vst [vmem:[%s1064_s3 + $0x8] sm:$0xff] %v765_v23   ;;  %v558_v27 = vadd.f32 %v1019_v47, %v535_v24  ;;  %v536_v28 = vmax.f32 %v504_v25, %v520_v26 }
 0x109   :  { %v559_v29 = vadd.f32 %v1019_v47, %v536_v28  ;;  %v337_v30 = vpop.f32.mrb[12].mxu0  ;;  %v450_v31 = vpop.f32.mrb[12].mxu1  ;;  %v574_v34 = vmax.f32 %v558_v27, 0.0 }
 0x10a   :  { %v339_v32 = vpop.f32.mrb[13].mxu0  ;;  %v452_v33 = vpop.f32.mrb[13].mxu1 }
 0x10b   :  { %v575_v35 = vmax.f32 %v559_v29, 0.0  ;;  %v505_v36 = vmax.f32 %v337_v30, %v339_v32  ;;  %v521_v37 = vmax.f32 %v450_v31, %v452_v33  ;;  %v341_v38 = vpop.f32.mrb[14].mxu0  ;;  %v454_v39 = vpop.f32.mrb[14].mxu1 }
 0x10c   :  { %v343_v40 = vpop.f32.mrb[15].mxu0  ;;  %v456_v41 = vpop.f32.mrb[15].mxu1 }
 0x10d   :  { %v770_v42 = vpack.c.bf16 %v575_v35, %v574_v34  ;;  %v537_v43 = vmax.f32 %v505_v36, %v521_v37  ;;  %v506_v44 = vmax.f32 %v341_v38, %v343_v40  ;;  %v522_v45 = vmax.f32 %v454_v39, %v456_v41 }
 0x10f   :  { %798 = vst [vmem:[%s1064_s3 + $0x10] sm:$0xff] %v770_v42   ;;  %v560_v46 = vadd.f32 %v1019_v47, %v537_v43  ;;  %v538_v48 = vmax.f32 %v506_v44, %v522_v45 }
 0x111   :  { %v561_v49 = vadd.f32 %v1019_v47, %v538_v48  ;;  %v347_v50 = vpop.f32.mrb[16].mxu0  ;;  %v460_v51 = vpop.f32.mrb[16].mxu1  ;;  %v576_v54 = vmax.f32 %v560_v46, 0.0 }
 0x112   :  { %v349_v52 = vpop.f32.mrb[17].mxu0  ;;  %v462_v53 = vpop.f32.mrb[17].mxu1 }
 0x113   :  { %v577_v55 = vmax.f32 %v561_v49, 0.0  ;;  %v507_v56 = vmax.f32 %v347_v50, %v349_v52  ;;  %v523_v57 = vmax.f32 %v460_v51, %v462_v53  ;;  %v351_v58 = vpop.f32.mrb[18].mxu0  ;;  %v464_v59 = vpop.f32.mrb[18].mxu1 }
 0x114   :  { %v353_v60 = vpop.f32.mrb[19].mxu0  ;;  %v466_v61 = vpop.f32.mrb[19].mxu1 }
 0x115   :  { %v775_v62 = vpack.c.bf16 %v577_v55, %v576_v54  ;;  %v539_v63 = vmax.f32 %v507_v56, %v523_v57  ;;  %v508_v0 = vmax.f32 %v351_v58, %v353_v60  ;;  %v524_v1 = vmax.f32 %v464_v59, %v466_v61 }
 0x117   :  { %799 = vst [vmem:[%s1064_s3 + $0x18] sm:$0xff] %v775_v62   ;;  %v562_v2 = vadd.f32 %v1019_v47, %v539_v63  ;;  %v540_v3 = vmax.f32 %v508_v0, %v524_v1 }
 0x119   :  { %v563_v4 = vadd.f32 %v1019_v47, %v540_v3  ;;  %v357_v5 = vpop.f32.mrb[20].mxu0  ;;  %v470_v6 = vpop.f32.mrb[20].mxu1  ;;  %v578_v9 = vmax.f32 %v562_v2, 0.0 }
 0x11a   :  { %v359_v7 = vpop.f32.mrb[21].mxu0  ;;  %v472_v8 = vpop.f32.mrb[21].mxu1 }
 0x11b   :  { %v579_v10 = vmax.f32 %v563_v4, 0.0  ;;  %v509_v11 = vmax.f32 %v357_v5, %v359_v7  ;;  %v525_v12 = vmax.f32 %v470_v6, %v472_v8  ;;  %v361_v13 = vpop.f32.mrb[22].mxu0  ;;  %v474_v14 = vpop.f32.mrb[22].mxu1 }
 0x11c   :  { %v363_v15 = vpop.f32.mrb[23].mxu0  ;;  %v476_v16 = vpop.f32.mrb[23].mxu1 }
 0x11d   :  { %v780_v17 = vpack.c.bf16 %v579_v10, %v578_v9  ;;  %v541_v18 = vmax.f32 %v509_v11, %v525_v12  ;;  %v510_v19 = vmax.f32 %v361_v13, %v363_v15  ;;  %v526_v20 = vmax.f32 %v474_v14, %v476_v16 }
 0x11f   :  { %800 = vst [vmem:[%s1064_s3 + $0x20] sm:$0xff] %v780_v17   ;;  %v564_v21 = vadd.f32 %v1019_v47, %v541_v18  ;;  %v542_v22 = vmax.f32 %v510_v19, %v526_v20 }
 0x121   :  { %v565_v23 = vadd.f32 %v1019_v47, %v542_v22  ;;  %v367_v24 = vpop.f32.mrb[24].mxu0  ;;  %v480_v25 = vpop.f32.mrb[24].mxu1  ;;  %v580_v28 = vmax.f32 %v564_v21, 0.0 }
 0x122   :  { %v369_v26 = vpop.f32.mrb[25].mxu0  ;;  %v482_v27 = vpop.f32.mrb[25].mxu1 }
 0x123   :  { %v581_v29 = vmax.f32 %v565_v23, 0.0  ;;  %v511_v30 = vmax.f32 %v367_v24, %v369_v26  ;;  %v527_v31 = vmax.f32 %v480_v25, %v482_v27  ;;  %v371_v32 = vpop.f32.mrb[26].mxu0  ;;  %v484_v33 = vpop.f32.mrb[26].mxu1 }
 0x124   :  { %v373_v34 = vpop.f32.mrb[27].mxu0  ;;  %v486_v35 = vpop.f32.mrb[27].mxu1 }
 0x125   :  { %v785_v36 = vpack.c.bf16 %v581_v29, %v580_v28  ;;  %v543_v37 = vmax.f32 %v511_v30, %v527_v31  ;;  %v512_v38 = vmax.f32 %v371_v32, %v373_v34  ;;  %v528_v39 = vmax.f32 %v484_v33, %v486_v35 }
 0x127   :  { %801 = vst [vmem:[%s1064_s3 + $0x28] sm:$0xff] %v785_v36   ;;  %v566_v40 = vadd.f32 %v1019_v47, %v543_v37  ;;  %v544_v41 = vmax.f32 %v512_v38, %v528_v39 }
 0x129   :  { %v567_v42 = vadd.f32 %v1019_v47, %v544_v41  ;;  %v377_v43 = vpop.f32.mrb[28].mxu0  ;;  %v490_v44 = vpop.f32.mrb[28].mxu1  ;;  %v582_v48 = vmax.f32 %v566_v40, 0.0 }
 0x12a   :  { %v379_v45 = vpop.f32.mrb[29].mxu0  ;;  %v492_v46 = vpop.f32.mrb[29].mxu1 }
 0x12b   :  { %v583_v49 = vmax.f32 %v567_v42, 0.0  ;;  %v513_v50 = vmax.f32 %v377_v43, %v379_v45  ;;  %v529_v51 = vmax.f32 %v490_v44, %v492_v46  ;;  %v381_v52 = vpop.f32.mrb[30].mxu0  ;;  %v494_v53 = vpop.f32.mrb[30].mxu1 }
 0x12c   :  { %v383_v54 = vpop.f32.mrb[31].mxu0  ;;  %v496_v55 = vpop.f32.mrb[31].mxu1 }
 0x12d   :  { %v790_v56 = vpack.c.bf16 %v583_v49, %v582_v48  ;;  %v545_v57 = vmax.f32 %v513_v50, %v529_v51  ;;  %v514_v58 = vmax.f32 %v381_v52, %v383_v54  ;;  %v530_v59 = vmax.f32 %v494_v53, %v496_v55 }
 0x12f   :  { %802 = vst [vmem:[%s1064_s3 + $0x30] sm:$0xff] %v790_v56   ;;  %v568_v60 = vadd.f32 %v1019_v47, %v545_v57  ;;  %v546_v61 = vmax.f32 %v514_v58, %v530_v59 }
 0x131   :  { %v569_v62 = vadd.f32 %v1019_v47, %v546_v61  ;;  %v584_v63 = vmax.f32 %v568_v60, 0.0 }
 0x133   :  { %v585_v0 = vmax.f32 %v569_v62, 0.0 }
 0x135   :  { %v795_v1 = vpack.c.bf16 %v585_v0, %v584_v63 }
 0x137   :  { %803 = vst [vmem:[%s1064_s3 + $0x38] sm:$0xff] %v795_v1  }

// kernel: cifar10_model_forward.3
= control target key start
LH: loop header
LB: loop body
LE: loop exit
PB: predicated region body
PF: predicated region fallthrough
CT: control target
= control target key end

     0   :  { %s9198_s1 = inlined_call_operand.vmem [shape: bf16[8192,128], index: 1, kind: input, shape index: {}]   ;;  %s9199_s0 = inlined_call_operand.vmem [shape: bf16[8,8192], index: 0, kind: input, shape index: {}]   ;;  %s9200_s2 = inlined_call_operand.vmem [shape: f32[1,128], index: 2, kind: input, shape index: {}]   ;;  %s9201_s3 = inlined_call_operand.vmem [shape: f32[8,128], index: 3, kind: output, shape index: {}]  }
   0x1   :  { %v6940_v0 = vld [vmem:[%s9198_s1 + $0x40] sm:$0xff]   ;;  %v6944_v4 = vld [vmem:[%s9198_s1 + $0x48] sm:$0xff]   ;;  %v6948_v8 = vld [vmem:[%s9198_s1 + $0x50] sm:$0xff]  }
   0x2   :  { %v6941_v1 = vld [vmem:[%s9198_s1 + $0xc0] sm:$0xff]   ;;  %6236 = vmatprep.subr.bf16.mxu0 %v6940_v0  ;;  %v6945_v5 = vld [vmem:[%s9198_s1 + $0xc8] sm:$0xff]   ;;  %v6949_v9 = vld [vmem:[%s9198_s1 + $0xd0] sm:$0xff]  }
   0x3   :  { %v6942_v2 = vld [vmem:[%s9198_s1] sm:$0xff]   ;;  %6258 = vmatprep.subr.bf16.mxu1 %v6941_v1  ;;  %v6946_v6 = vld [vmem:[%s9198_s1 + $0x8] sm:$0xff]   ;;  %v6950_v10 = vld [vmem:[%s9198_s1 + $0x10] sm:$0xff]  }
   0x4   :  { %v6943_v3 = vld [vmem:[%s9198_s1 + $0x80] sm:$0xff]   ;;  %6237 = vmatpush3.bf16.msra.mxu0 %v6942_v2  ;;  %v6947_v7 = vld [vmem:[%s9198_s1 + $0x88] sm:$0xff]   ;;  %v6951_v11 = vld [vmem:[%s9198_s1 + $0x90] sm:$0xff]  }
   0x5   :  { %6259 = vmatpush3.bf16.msra.mxu1 %v6943_v3  ;;  %6238 = vmatprep.subr.bf16.mxu0 %v6944_v4  ;;  %v6952_v12 = vld [vmem:[%s9198_s1 + $0x58] sm:$0xff]   ;;  %v6956_v16 = vld [vmem:[%s9198_s1 + $0x60] sm:$0xff]   ;;  %v6960_v20 = vld [vmem:[%s9198_s1 + $0x68] sm:$0xff]  }
   0x6   :  { %6260 = vmatprep.subr.bf16.mxu1 %v6945_v5  ;;  %v6953_v13 = vld [vmem:[%s9198_s1 + $0xd8] sm:$0xff]   ;;  %v6957_v17 = vld [vmem:[%s9198_s1 + $0xe0] sm:$0xff]   ;;  %v6961_v21 = vld [vmem:[%s9198_s1 + $0xe8] sm:$0xff]  }
   0x7   :  { %v6954_v14 = vld [vmem:[%s9198_s1 + $0x18] sm:$0xff]   ;;  %v6958_v18 = vld [vmem:[%s9198_s1 + $0x20] sm:$0xff]   ;;  %v6962_v22 = vld [vmem:[%s9198_s1 + $0x28] sm:$0xff]  }
   0x8   :  { %6239 = vmatpush3.bf16.msra.mxu0 %v6946_v6  ;;  %v6955_v15 = vld [vmem:[%s9198_s1 + $0x98] sm:$0xff]   ;;  %v6959_v19 = vld [vmem:[%s9198_s1 + $0xa0] sm:$0xff]   ;;  %v6963_v23 = vld [vmem:[%s9198_s1 + $0xa8] sm:$0xff]  }
   0x9   :  { %6261 = vmatpush3.bf16.msra.mxu1 %v6947_v7  ;;  %6240 = vmatprep.subr.bf16.mxu0 %v6948_v8  ;;  %v6964_v24 = vld [vmem:[%s9198_s1 + $0x70] sm:$0xff]   ;;  %v6968_v28 = vld [vmem:[%s9198_s1 + $0x78] sm:$0xff]   ;;  %v15_v32 = vld [vmem:[%s9199_s0] sm:$0xff] }
   0xa   :  { %6262 = vmatprep.subr.bf16.mxu1 %v6949_v9  ;;  %v6965_v25 = vld [vmem:[%s9198_s1 + $0xf0] sm:$0xff]   ;;  %v6969_v29 = vld [vmem:[%s9198_s1 + $0xf8] sm:$0xff]   ;;  %v16_v33 = vld [vmem:[%s9199_s0 + $0x8] sm:$0xff]  ;;  %v5660_v34 = vcombine.low %v15_v32, %v15_v32  ;;  %v5661_v35 = vcombine.high %v15_v32, %v15_v32 }
   0xb   :  { %v6966_v26 = vld [vmem:[%s9198_s1 + $0x30] sm:$0xff]   ;;  %v6970_v30 = vld [vmem:[%s9198_s1 + $0x38] sm:$0xff]   ;;  %v5662_v36 = vcombine.low %v16_v33, %v16_v33  ;;  %v5663_v37 = vcombine.high %v16_v33, %v16_v33  ;;  %v6976_v38 = vld [vmem:[%s9198_s1 + $0x140] sm:$0xff]  }
   0xc   :  { %6241 = vmatpush3.bf16.msra.mxu0 %v6950_v10  ;;  %v6967_v27 = vld [vmem:[%s9198_s1 + $0xb0] sm:$0xff]   ;;  %v6971_v31 = vld [vmem:[%s9198_s1 + $0xb8] sm:$0xff]   ;;  %v6977_v39 = vld [vmem:[%s9198_s1 + $0x1c0] sm:$0xff]   ;;  %4406 = vmatprep.mubr.bf16.mxu0 %v5661_v35 }
   0xd   :  { %6263 = vmatpush3.bf16.msra.mxu1 %v6951_v11  ;;  %6242 = vmatprep.subr.bf16.mxu0 %v6952_v12  ;;  %v6978_v40 = vld [vmem:[%s9198_s1 + $0x100] sm:$0xff]   ;;  %v6980_v42 = vld [vmem:[%s9198_s1 + $0x148] sm:$0xff]   ;;  %v6984_v46 = vld [vmem:[%s9198_s1 + $0x150] sm:$0xff]  }
   0xe   :  { %6264 = vmatprep.subr.bf16.mxu1 %v6953_v13  ;;  %4446 = vmatprep.mubr.bf16.mxu1 %v5663_v37  ;;  %v6979_v41 = vld [vmem:[%s9198_s1 + $0x180] sm:$0xff]   ;;  %v6981_v43 = vld [vmem:[%s9198_s1 + $0x1c8] sm:$0xff]   ;;  %v6985_v47 = vld [vmem:[%s9198_s1 + $0x1d0] sm:$0xff]  }
   0xf   :  { %v6982_v44 = vld [vmem:[%s9198_s1 + $0x108] sm:$0xff]   ;;  %v6986_v48 = vld [vmem:[%s9198_s1 + $0x110] sm:$0xff]   ;;  %v6988_v50 = vld [vmem:[%s9198_s1 + $0x158] sm:$0xff]  }
  0x10   :  { %6243 = vmatpush3.bf16.msra.mxu0 %v6954_v14  ;;  %v6983_v45 = vld [vmem:[%s9198_s1 + $0x188] sm:$0xff]   ;;  %v6987_v49 = vld [vmem:[%s9198_s1 + $0x190] sm:$0xff]   ;;  %v6989_v51 = vld [vmem:[%s9198_s1 + $0x1d8] sm:$0xff]  }
  0x11   :  { %6265 = vmatpush3.bf16.msra.mxu1 %v6955_v15  ;;  %6244 = vmatprep.subr.bf16.mxu0 %v6956_v16  ;;  %v6990_v52 = vld [vmem:[%s9198_s1 + $0x118] sm:$0xff]   ;;  %v6992_v54 = vld [vmem:[%s9198_s1 + $0x160] sm:$0xff]   ;;  %v6996_v58 = vld [vmem:[%s9198_s1 + $0x168] sm:$0xff]  }
  0x12   :  { %6266 = vmatprep.subr.bf16.mxu1 %v6957_v17  ;;  %v6991_v53 = vld [vmem:[%s9198_s1 + $0x198] sm:$0xff]   ;;  %v6993_v55 = vld [vmem:[%s9198_s1 + $0x1e0] sm:$0xff]   ;;  %v6997_v59 = vld [vmem:[%s9198_s1 + $0x1e8] sm:$0xff]  }
  0x13   :  { %v6994_v56 = vld [vmem:[%s9198_s1 + $0x120] sm:$0xff]   ;;  %v6998_v60 = vld [vmem:[%s9198_s1 + $0x128] sm:$0xff]   ;;  %v7000_v62 = vld [vmem:[%s9198_s1 + $0x170] sm:$0xff]  }
  0x14   :  { %6245 = vmatpush3.bf16.msra.mxu0 %v6958_v18  ;;  %v6995_v57 = vld [vmem:[%s9198_s1 + $0x1a0] sm:$0xff]   ;;  %v6999_v61 = vld [vmem:[%s9198_s1 + $0x1a8] sm:$0xff]   ;;  %v7001_v63 = vld [vmem:[%s9198_s1 + $0x1f0] sm:$0xff]  }
  0x15   :  { %6267 = vmatpush3.bf16.msra.mxu1 %v6959_v19  ;;  %6246 = vmatprep.subr.bf16.mxu0 %v6960_v20  ;;  %v7002_v0 = vld [vmem:[%s9198_s1 + $0x130] sm:$0xff]   ;;  %v7004_v2 = vld [vmem:[%s9198_s1 + $0x178] sm:$0xff]   ;;  %v7012_v12 = vld [vmem:[%s9198_s1 + $0x240] sm:$0xff]  }
  0x16   :  { %6268 = vmatprep.subr.bf16.mxu1 %v6961_v21  ;;  %v7003_v1 = vld [vmem:[%s9198_s1 + $0x1b0] sm:$0xff]   ;;  %v7005_v3 = vld [vmem:[%s9198_s1 + $0x1f8] sm:$0xff]   ;;  %v7013_v13 = vld [vmem:[%s9198_s1 + $0x2c0] sm:$0xff]  }
  0x17   :  { %v7006_v4 = vld [vmem:[%s9198_s1 + $0x138] sm:$0xff]   ;;  %v17_v6 = vld [vmem:[%s9199_s0 + $0x10] sm:$0xff]  ;;  %v7014_v14 = vld [vmem:[%s9198_s1 + $0x200] sm:$0xff]  }
  0x18   :  { %6247 = vmatpush3.bf16.msra.mxu0 %v6962_v22  ;;  %v7007_v5 = vld [vmem:[%s9198_s1 + $0x1b8] sm:$0xff]   ;;  %v5664_v7 = vcombine.low %v17_v6, %v17_v6  ;;  %v5665_v8 = vcombine.high %v17_v6, %v17_v6  ;;  %v7015_v15 = vld [vmem:[%s9198_s1 + $0x280] sm:$0xff]   ;;  %v7016_v16 = vld [vmem:[%s9198_s1 + $0x248] sm:$0xff]  }
  0x19   :  { %6269 = vmatpush3.bf16.msra.mxu1 %v6963_v23  ;;  %6248 = vmatprep.subr.bf16.mxu0 %v6964_v24  ;;  %v18_v9 = vld [vmem:[%s9199_s0 + $0x18] sm:$0xff]  ;;  %v7017_v17 = vld [vmem:[%s9198_s1 + $0x2c8] sm:$0xff]   ;;  %v7020_v20 = vld [vmem:[%s9198_s1 + $0x250] sm:$0xff]  }
  0x1a   :  { %6270 = vmatprep.subr.bf16.mxu1 %v6965_v25  ;;  %v5666_v10 = vcombine.low %v18_v9, %v18_v9  ;;  %v5667_v11 = vcombine.high %v18_v9, %v18_v9  ;;  %v7018_v18 = vld [vmem:[%s9198_s1 + $0x208] sm:$0xff]   ;;  %v7021_v21 = vld [vmem:[%s9198_s1 + $0x2d0] sm:$0xff]   ;;  %v7024_v24 = vld [vmem:[%s9198_s1 + $0x258] sm:$0xff]  }
  0x1b   :  { %v7019_v19 = vld [vmem:[%s9198_s1 + $0x288] sm:$0xff]   ;;  %v7022_v22 = vld [vmem:[%s9198_s1 + $0x210] sm:$0xff]   ;;  %v7025_v25 = vld [vmem:[%s9198_s1 + $0x2d8] sm:$0xff]  }
  0x1c   :  { %6249 = vmatpush3.bf16.msra.mxu0 %v6966_v26  ;;  %v7023_v23 = vld [vmem:[%s9198_s1 + $0x290] sm:$0xff]   ;;  %v7026_v26 = vld [vmem:[%s9198_s1 + $0x218] sm:$0xff]   ;;  %v7032_v32 = vld [vmem:[%s9198_s1 + $0x268] sm:$0xff]  }
  0x1d   :  { %6271 = vmatpush3.bf16.msra.mxu1 %v6967_v27  ;;  %6250 = vmatprep.subr.bf16.mxu0 %v6968_v28  ;;  %v7027_v27 = vld [vmem:[%s9198_s1 + $0x298] sm:$0xff]   ;;  %v7028_v28 = vld [vmem:[%s9198_s1 + $0x260] sm:$0xff]   ;;  %v7033_v33 = vld [vmem:[%s9198_s1 + $0x2e8] sm:$0xff]  }
  0x1e   :  { %6272 = vmatprep.subr.bf16.mxu1 %v6969_v29  ;;  %v7029_v29 = vld [vmem:[%s9198_s1 + $0x2e0] sm:$0xff]   ;;  %v7035_v35 = vld [vmem:[%s9198_s1 + $0x2a8] sm:$0xff]   ;;  %v7037_v37 = vld [vmem:[%s9198_s1 + $0x2f0] sm:$0xff]  }
  0x1f   :  { %v7068_v6 = vld [vmem:[%s9198_s1 + $0x368] sm:$0xff]  }
  0x20   :  { %6251 = vmatpush3.bf16.msra.mxu0 %v6970_v30  ;;  %v7030_v30 = vld [vmem:[%s9198_s1 + $0x220] sm:$0xff]   ;;  %v7071_v9 = vld [vmem:[%s9198_s1 + $0x3a8] sm:$0xff]  }
  0x21   :  { %6273 = vmatpush3.bf16.msra.mxu1 %v6971_v31  ;;  %6280 = vmatprep.subr.bf16.mxu0 %v6976_v38  ;;  %v7031_v31 = vld [vmem:[%s9198_s1 + $0x2a0] sm:$0xff]   ;;  %v7038_v38 = vld [vmem:[%s9198_s1 + $0x230] sm:$0xff]  }
  0x22   :  { %6302 = vmatprep.subr.bf16.mxu1 %v6977_v39  ;;  %v7039_v39 = vld [vmem:[%s9198_s1 + $0x2b0] sm:$0xff]  }
  0x23   :  { %4407 = vmatmul.mubr.bf16.vlgmr.msra.gmra.mrb[0].mxu0 %v5660_v34  ;;  %v7034_v34 = vld [vmem:[%s9198_s1 + $0x228] sm:$0xff]  }
  0x24   :  { %4447 = vmatmul.mubr.bf16.vlgmr.msra.gmra.mrb[0].mxu1 %v5662_v36  ;;  %6281 = vmatpush3.bf16.msra.mxu0 %v6978_v40  ;;  %v7036_v36 = vld [vmem:[%s9198_s1 + $0x270] sm:$0xff]   ;;  %v7040_v40 = vld [vmem:[%s9198_s1 + $0x278] sm:$0xff]  }
  0x25   :  { %6303 = vmatpush3.bf16.msra.mxu1 %v6979_v41  ;;  %6282 = vmatprep.subr.bf16.mxu0 %v6980_v42  ;;  %v7041_v41 = vld [vmem:[%s9198_s1 + $0x2f8] sm:$0xff]  }
  0x26   :  { %6304 = vmatprep.subr.bf16.mxu1 %v6981_v43  ;;  %4486 = vmatprep.mubr.bf16.mxu0 %v5665_v8  ;;  %v7042_v42 = vld [vmem:[%s9198_s1 + $0x238] sm:$0xff]   ;;  %v7070_v8 = vld [vmem:[%s9198_s1 + $0x328] sm:$0xff]  }
  0x27   :  { %4526 = vmatprep.mubr.bf16.mxu1 %v5667_v11  ;;  %v7043_v43 = vld [vmem:[%s9198_s1 + $0x2b8] sm:$0xff]   ;;  %v7073_v11 = vld [vmem:[%s9198_s1 + $0x3f0] sm:$0xff]  }
  0x28   :  { %6283 = vmatpush3.bf16.msra.mxu0 %v6982_v44  ;;  %v19_v44 = vld [vmem:[%s9199_s0 + $0x20] sm:$0xff] }
  0x29   :  { %6305 = vmatpush3.bf16.msra.mxu1 %v6983_v45  ;;  %6284 = vmatprep.subr.bf16.mxu0 %v6984_v46  ;;  %v20_v45 = vld [vmem:[%s9199_s0 + $0x28] sm:$0xff]  ;;  %v5668_v46 = vcombine.low %v19_v44, %v19_v44 }
  0x2a   :  { %6306 = vmatprep.subr.bf16.mxu1 %v6985_v47  ;;  %v5669_v47 = vcombine.high %v19_v44, %v19_v44  ;;  %v7104_v44 = vld [vmem:[%s9198_s1 + $0x468] sm:$0xff]  }
  0x2c   :  { %6285 = vmatpush3.bf16.msra.mxu0 %v6986_v48  ;;  %v5670_v48 = vcombine.low %v20_v45, %v20_v45 }
  0x2d   :  { %6307 = vmatpush3.bf16.msra.mxu1 %v6987_v49  ;;  %6286 = vmatprep.subr.bf16.mxu0 %v6988_v50  ;;  %v5671_v49 = vcombine.high %v20_v45, %v20_v45  ;;  %v7048_v50 = vld [vmem:[%s9198_s1 + $0x340] sm:$0xff]   ;;  %v7105_v45 = vld [vmem:[%s9198_s1 + $0x4e8] sm:$0xff]  }
  0x2e   :  { %6308 = vmatprep.subr.bf16.mxu1 %v6989_v51  ;;  %v7049_v51 = vld [vmem:[%s9198_s1 + $0x3c0] sm:$0xff]  }
  0x30   :  { %6287 = vmatpush3.bf16.msra.mxu0 %v6990_v52  ;;  %v7050_v52 = vld [vmem:[%s9198_s1 + $0x300] sm:$0xff]  }
  0x31   :  { %6309 = vmatpush3.bf16.msra.mxu1 %v6991_v53  ;;  %6288 = vmatprep.subr.bf16.mxu0 %v6992_v54  ;;  %v7051_v53 = vld [vmem:[%s9198_s1 + $0x380] sm:$0xff]   ;;  %v7052_v54 = vld [vmem:[%s9198_s1 + $0x348] sm:$0xff]  }
  0x32   :  { %6310 = vmatprep.subr.bf16.mxu1 %v6993_v55  ;;  %v7053_v55 = vld [vmem:[%s9198_s1 + $0x3c8] sm:$0xff]  }
  0x34   :  { %6289 = vmatpush3.bf16.msra.mxu0 %v6994_v56  ;;  %v7054_v56 = vld [vmem:[%s9198_s1 + $0x308] sm:$0xff]  }
  0x35   :  { %6311 = vmatpush3.bf16.msra.mxu1 %v6995_v57  ;;  %6290 = vmatprep.subr.bf16.mxu0 %v6996_v58  ;;  %v7055_v57 = vld [vmem:[%s9198_s1 + $0x388] sm:$0xff]   ;;  %v7056_v58 = vld [vmem:[%s9198_s1 + $0x350] sm:$0xff]  }
  0x36   :  { %6312 = vmatprep.subr.bf16.mxu1 %v6997_v59  ;;  %v7057_v59 = vld [vmem:[%s9198_s1 + $0x3d0] sm:$0xff]  }
  0x38   :  { %6291 = vmatpush3.bf16.msra.mxu0 %v6998_v60  ;;  %v7058_v60 = vld [vmem:[%s9198_s1 + $0x310] sm:$0xff]  }
  0x39   :  { %6313 = vmatpush3.bf16.msra.mxu1 %v6999_v61  ;;  %6292 = vmatprep.subr.bf16.mxu0 %v7000_v62  ;;  %v7059_v61 = vld [vmem:[%s9198_s1 + $0x390] sm:$0xff]   ;;  %v7060_v62 = vld [vmem:[%s9198_s1 + $0x358] sm:$0xff]  }
  0x3a   :  { %6314 = vmatprep.subr.bf16.mxu1 %v7001_v63  ;;  %v7061_v63 = vld [vmem:[%s9198_s1 + $0x3d8] sm:$0xff]  }
  0x3c   :  { %6293 = vmatpush3.bf16.msra.mxu0 %v7002_v0  ;;  %v7062_v0 = vld [vmem:[%s9198_s1 + $0x318] sm:$0xff]  }
  0x3d   :  { %6315 = vmatpush3.bf16.msra.mxu1 %v7003_v1  ;;  %6294 = vmatprep.subr.bf16.mxu0 %v7004_v2  ;;  %v7063_v1 = vld [vmem:[%s9198_s1 + $0x398] sm:$0xff]   ;;  %v7064_v2 = vld [vmem:[%s9198_s1 + $0x360] sm:$0xff]  }
  0x3e   :  { %6316 = vmatprep.subr.bf16.mxu1 %v7005_v3  ;;  %v7065_v3 = vld [vmem:[%s9198_s1 + $0x3e0] sm:$0xff]  }
  0x40   :  { %6295 = vmatpush3.bf16.msra.mxu0 %v7006_v4  ;;  %v7066_v4 = vld [vmem:[%s9198_s1 + $0x320] sm:$0xff]  }
  0x41   :  { %6317 = vmatpush3.bf16.msra.mxu1 %v7007_v5  ;;  %6324 = vmatprep.subr.bf16.mxu0 %v7012_v12  ;;  %v7067_v5 = vld [vmem:[%s9198_s1 + $0x3a0] sm:$0xff]   ;;  %v7074_v12 = vld [vmem:[%s9198_s1 + $0x330] sm:$0xff]  }
  0x42   :  { %6346 = vmatprep.subr.bf16.mxu1 %v7013_v13  ;;  %v7075_v13 = vld [vmem:[%s9198_s1 + $0x3b0] sm:$0xff]  }
  0x43   :  { %4487 = vmatmul.mubr.bf16.vlgmr.msra.gmra.mrb[4].mxu0 %v5664_v7  ;;  %v7069_v7 = vld [vmem:[%s9198_s1 + $0x3e8] sm:$0xff]  }
  0x44   :  { %4527 = vmatmul.mubr.bf16.vlgmr.msra.gmra.mrb[4].mxu1 %v5666_v10  ;;  %6325 = vmatpush3.bf16.msra.mxu0 %v7014_v14  ;;  %v7072_v10 = vld [vmem:[%s9198_s1 + $0x370] sm:$0xff]   ;;  %v7076_v14 = vld [vmem:[%s9198_s1 + $0x378] sm:$0xff]  }
  0x45   :  { %6347 = vmatpush3.bf16.msra.mxu1 %v7015_v15  ;;  %6326 = vmatprep.subr.bf16.mxu0 %v7016_v16  ;;  %v7077_v15 = vld [vmem:[%s9198_s1 + $0x3f8] sm:$0xff]  }
  0x46   :  { %6348 = vmatprep.subr.bf16.mxu1 %v7017_v17  ;;  %4566 = vmatprep.mubr.bf16.mxu0 %v5669_v47  ;;  %v7078_v16 = vld [vmem:[%s9198_s1 + $0x338] sm:$0xff]   ;;  %v7107_v47 = vld [vmem:[%s9198_s1 + $0x4a8] sm:$0xff]  }
  0x47   :  { %4606 = vmatprep.mubr.bf16.mxu1 %v5671_v49  ;;  %v7079_v17 = vld [vmem:[%s9198_s1 + $0x3b8] sm:$0xff]   ;;  %v7109_v49 = vld [vmem:[%s9198_s1 + $0x4f0] sm:$0xff]  }
  0x48   :  { %6327 = vmatpush3.bf16.msra.mxu0 %v7018_v18  ;;  %v21_v18 = vld [vmem:[%s9199_s0 + $0x30] sm:$0xff] }
  0x49   :  { %6349 = vmatpush3.bf16.msra.mxu1 %v7019_v19  ;;  %6328 = vmatprep.subr.bf16.mxu0 %v7020_v20  ;;  %v22_v19 = vld [vmem:[%s9199_s0 + $0x38] sm:$0xff]  ;;  %v5672_v20 = vcombine.low %v21_v18, %v21_v18 }
  0x4a   :  { %6350 = vmatprep.subr.bf16.mxu1 %v7021_v21  ;;  %v5673_v21 = vcombine.high %v21_v18, %v21_v18  ;;  %v7140_v18 = vld [vmem:[%s9198_s1 + $0x568] sm:$0xff]  }
  0x4c   :  { %6329 = vmatpush3.bf16.msra.mxu0 %v7022_v22  ;;  %v5674_v22 = vcombine.low %v22_v19, %v22_v19 }
  0x4d   :  { %6351 = vmatpush3.bf16.msra.mxu1 %v7023_v23  ;;  %6330 = vmatprep.subr.bf16.mxu0 %v7024_v24  ;;  %v7084_v23 = vld [vmem:[%s9198_s1 + $0x440] sm:$0xff]   ;;  %v5675_v24 = vcombine.high %v22_v19, %v22_v19  ;;  %v7141_v19 = vld [vmem:[%s9198_s1 + $0x5e8] sm:$0xff]  }
  0x4e   :  { %6352 = vmatprep.subr.bf16.mxu1 %v7025_v25  ;;  %v7085_v25 = vld [vmem:[%s9198_s1 + $0x4c0] sm:$0xff]  }
  0x50   :  { %6331 = vmatpush3.bf16.msra.mxu0 %v7026_v26  ;;  %v7086_v26 = vld [vmem:[%s9198_s1 + $0x400] sm:$0xff]  }
  0x51   :  { %6353 = vmatpush3.bf16.msra.mxu1 %v7027_v27  ;;  %6332 = vmatprep.subr.bf16.mxu0 %v7028_v28  ;;  %v7087_v27 = vld [vmem:[%s9198_s1 + $0x480] sm:$0xff]   ;;  %v7088_v28 = vld [vmem:[%s9198_s1 + $0x448] sm:$0xff]  }
  0x52   :  { %6354 = vmatprep.subr.bf16.mxu1 %v7029_v29  ;;  %v7089_v29 = vld [vmem:[%s9198_s1 + $0x4c8] sm:$0xff]  }
  0x54   :  { %6333 = vmatpush3.bf16.msra.mxu0 %v7030_v30  ;;  %v7090_v30 = vld [vmem:[%s9198_s1 + $0x408] sm:$0xff]  }
  0x55   :  { %6355 = vmatpush3.bf16.msra.mxu1 %v7031_v31  ;;  %6334 = vmatprep.subr.bf16.mxu0 %v7032_v32  ;;  %v7091_v31 = vld [vmem:[%s9198_s1 + $0x488] sm:$0xff]   ;;  %v7092_v32 = vld [vmem:[%s9198_s1 + $0x450] sm:$0xff]  }
  0x56   :  { %6356 = vmatprep.subr.bf16.mxu1 %v7033_v33  ;;  %v7093_v33 = vld [vmem:[%s9198_s1 + $0x4d0] sm:$0xff]  }
  0x58   :  { %6335 = vmatpush3.bf16.msra.mxu0 %v7034_v34  ;;  %v7094_v34 = vld [vmem:[%s9198_s1 + $0x410] sm:$0xff]  }
  0x59   :  { %6357 = vmatpush3.bf16.msra.mxu1 %v7035_v35  ;;  %6336 = vmatprep.subr.bf16.mxu0 %v7036_v36  ;;  %v7095_v35 = vld [vmem:[%s9198_s1 + $0x490] sm:$0xff]   ;;  %v7096_v36 = vld [vmem:[%s9198_s1 + $0x458] sm:$0xff]  }
  0x5a   :  { %6358 = vmatprep.subr.bf16.mxu1 %v7037_v37  ;;  %v7097_v37 = vld [vmem:[%s9198_s1 + $0x4d8] sm:$0xff]  }
  0x5c   :  { %6337 = vmatpush3.bf16.msra.mxu0 %v7038_v38  ;;  %v7098_v38 = vld [vmem:[%s9198_s1 + $0x418] sm:$0xff]  }
  0x5d   :  { %6359 = vmatpush3.bf16.msra.mxu1 %v7039_v39  ;;  %6338 = vmatprep.subr.bf16.mxu0 %v7040_v40  ;;  %v7099_v39 = vld [vmem:[%s9198_s1 + $0x498] sm:$0xff]   ;;  %v7100_v40 = vld [vmem:[%s9198_s1 + $0x460] sm:$0xff]  }
  0x5e   :  { %6360 = vmatprep.subr.bf16.mxu1 %v7041_v41  ;;  %v7101_v41 = vld [vmem:[%s9198_s1 + $0x4e0] sm:$0xff]  }
  0x60   :  { %6339 = vmatpush3.bf16.msra.mxu0 %v7042_v42  ;;  %v7102_v42 = vld [vmem:[%s9198_s1 + $0x420] sm:$0xff]  }
  0x61   :  { %6361 = vmatpush3.bf16.msra.mxu1 %v7043_v43  ;;  %6368 = vmatprep.subr.bf16.mxu0 %v7048_v50  ;;  %v7103_v43 = vld [vmem:[%s9198_s1 + $0x4a0] sm:$0xff]   ;;  %v7110_v50 = vld [vmem:[%s9198_s1 + $0x430] sm:$0xff]  }
  0x62   :  { %6390 = vmatprep.subr.bf16.mxu1 %v7049_v51  ;;  %v7111_v51 = vld [vmem:[%s9198_s1 + $0x4b0] sm:$0xff]  }
  0x63   :  { %4567 = vmatmul.mubr.bf16.vlgmr.msra.gmra.mrb[8].mxu0 %v5668_v46  ;;  %v7106_v46 = vld [vmem:[%s9198_s1 + $0x428] sm:$0xff]  }
  0x64   :  { %4607 = vmatmul.mubr.bf16.vlgmr.msra.gmra.mrb[8].mxu1 %v5670_v48  ;;  %6369 = vmatpush3.bf16.msra.mxu0 %v7050_v52  ;;  %v7108_v48 = vld [vmem:[%s9198_s1 + $0x470] sm:$0xff]   ;;  %v7112_v52 = vld [vmem:[%s9198_s1 + $0x478] sm:$0xff]  }
  0x65   :  { %6391 = vmatpush3.bf16.msra.mxu1 %v7051_v53  ;;  %6370 = vmatprep.subr.bf16.mxu0 %v7052_v54  ;;  %v7113_v53 = vld [vmem:[%s9198_s1 + $0x4f8] sm:$0xff]  }
  0x66   :  { %6392 = vmatprep.subr.bf16.mxu1 %v7053_v55  ;;  %4646 = vmatprep.mubr.bf16.mxu0 %v5673_v21  ;;  %v7114_v54 = vld [vmem:[%s9198_s1 + $0x438] sm:$0xff]   ;;  %v7143_v21 = vld [vmem:[%s9198_s1 + $0x5a8] sm:$0xff]  }
  0x67   :  { %4686 = vmatprep.mubr.bf16.mxu1 %v5675_v24  ;;  %v7115_v55 = vld [vmem:[%s9198_s1 + $0x4b8] sm:$0xff]   ;;  %v7146_v24 = vld [vmem:[%s9198_s1 + $0x530] sm:$0xff]  }
  0x68   :  { %6371 = vmatpush3.bf16.msra.mxu0 %v7054_v56  ;;  %v23_v56 = vld [vmem:[%s9199_s0 + $0x40] sm:$0xff] }
  0x69   :  { %6393 = vmatpush3.bf16.msra.mxu1 %v7055_v57  ;;  %6372 = vmatprep.subr.bf16.mxu0 %v7056_v58  ;;  %v5676_v57 = vcombine.low %v23_v56, %v23_v56  ;;  %v5677_v58 = vcombine.high %v23_v56, %v23_v56  ;;  %v7176_v56 = vld [vmem:[%s9198_s1 + $0x668] sm:$0xff]  }
  0x6a   :  { %6394 = vmatprep.subr.bf16.mxu1 %v7057_v59  ;;  %v24_v59 = vld [vmem:[%s9199_s0 + $0x48] sm:$0xff] }
  0x6c   :  { %6373 = vmatpush3.bf16.msra.mxu0 %v7058_v60  ;;  %v5678_v60 = vcombine.low %v24_v59, %v24_v59 }
  0x6d   :  { %6395 = vmatpush3.bf16.msra.mxu1 %v7059_v61  ;;  %6374 = vmatprep.subr.bf16.mxu0 %v7060_v62  ;;  %v5679_v61 = vcombine.high %v24_v59, %v24_v59  ;;  %v7120_v62 = vld [vmem:[%s9198_s1 + $0x540] sm:$0xff]   ;;  %v7179_v59 = vld [vmem:[%s9198_s1 + $0x6a8] sm:$0xff]  }
  0x6e   :  { %6396 = vmatprep.subr.bf16.mxu1 %v7061_v63  ;;  %v7121_v63 = vld [vmem:[%s9198_s1 + $0x5c0] sm:$0xff]  }
  0x70   :  { %6375 = vmatpush3.bf16.msra.mxu0 %v7062_v0  ;;  %v7122_v0 = vld [vmem:[%s9198_s1 + $0x500] sm:$0xff]  }
  0x71   :  { %6397 = vmatpush3.bf16.msra.mxu1 %v7063_v1  ;;  %6376 = vmatprep.subr.bf16.mxu0 %v7064_v2  ;;  %v7123_v1 = vld [vmem:[%s9198_s1 + $0x580] sm:$0xff]   ;;  %v7124_v2 = vld [vmem:[%s9198_s1 + $0x548] sm:$0xff]  }
  0x72   :  { %6398 = vmatprep.subr.bf16.mxu1 %v7065_v3  ;;  %v7125_v3 = vld [vmem:[%s9198_s1 + $0x5c8] sm:$0xff]  }
  0x74   :  { %6377 = vmatpush3.bf16.msra.mxu0 %v7066_v4  ;;  %v7126_v4 = vld [vmem:[%s9198_s1 + $0x508] sm:$0xff]  }
  0x75   :  { %6399 = vmatpush3.bf16.msra.mxu1 %v7067_v5  ;;  %6378 = vmatprep.subr.bf16.mxu0 %v7068_v6  ;;  %v7127_v5 = vld [vmem:[%s9198_s1 + $0x588] sm:$0xff]   ;;  %v7128_v6 = vld [vmem:[%s9198_s1 + $0x550] sm:$0xff]  }
  0x76   :  { %6400 = vmatprep.subr.bf16.mxu1 %v7069_v7  ;;  %v7129_v7 = vld [vmem:[%s9198_s1 + $0x5d0] sm:$0xff]  }
  0x78   :  { %6379 = vmatpush3.bf16.msra.mxu0 %v7070_v8  ;;  %v7130_v8 = vld [vmem:[%s9198_s1 + $0x510] sm:$0xff]  }
  0x79   :  { %6401 = vmatpush3.bf16.msra.mxu1 %v7071_v9  ;;  %6380 = vmatprep.subr.bf16.mxu0 %v7072_v10  ;;  %v7131_v9 = vld [vmem:[%s9198_s1 + $0x590] sm:$0xff]   ;;  %v7132_v10 = vld [vmem:[%s9198_s1 + $0x558] sm:$0xff]  }
  0x7a   :  { %6402 = vmatprep.subr.bf16.mxu1 %v7073_v11  ;;  %v7133_v11 = vld [vmem:[%s9198_s1 + $0x5d8] sm:$0xff]  }
  0x7c   :  { %6381 = vmatpush3.bf16.msra.mxu0 %v7074_v12  ;;  %v7134_v12 = vld [vmem:[%s9198_s1 + $0x518] sm:$0xff]  }
  0x7d   :  { %6403 = vmatpush3.bf16.msra.mxu1 %v7075_v13  ;;  %6382 = vmatprep.subr.bf16.mxu0 %v7076_v14  ;;  %v7135_v13 = vld [vmem:[%s9198_s1 + $0x598] sm:$0xff]   ;;  %v7136_v14 = vld [vmem:[%s9198_s1 + $0x560] sm:$0xff]  }
  0x7e   :  { %6404 = vmatprep.subr.bf16.mxu1 %v7077_v15  ;;  %v7137_v15 = vld [vmem:[%s9198_s1 + $0x5e0] sm:$0xff]  }
  0x80   :  { %6383 = vmatpush3.bf16.msra.mxu0 %v7078_v16  ;;  %v7138_v16 = vld [vmem:[%s9198_s1 + $0x520] sm:$0xff]  }
  0x81   :  { %6405 = vmatpush3.bf16.msra.mxu1 %v7079_v17  ;;  %6412 = vmatprep.subr.bf16.mxu0 %v7084_v23  ;;  %v7139_v17 = vld [vmem:[%s9198_s1 + $0x5a0] sm:$0xff]   ;;  %v7145_v23 = vld [vmem:[%s9198_s1 + $0x5f0] sm:$0xff]  }
  0x82   :  { %6434 = vmatprep.subr.bf16.mxu1 %v7085_v25  ;;  %v7147_v25 = vld [vmem:[%s9198_s1 + $0x5b0] sm:$0xff]  }
  0x83   :  { %4647 = vmatmul.mubr.bf16.vlgmr.msra.gmra.mrb[12].mxu0 %v5672_v20  ;;  %v7142_v20 = vld [vmem:[%s9198_s1 + $0x528] sm:$0xff]  }
  0x84   :  { %4687 = vmatmul.mubr.bf16.vlgmr.msra.gmra.mrb[12].mxu1 %v5674_v22  ;;  %6413 = vmatpush3.bf16.msra.mxu0 %v7086_v26  ;;  %v7144_v22 = vld [vmem:[%s9198_s1 + $0x570] sm:$0xff]   ;;  %v7148_v26 = vld [vmem:[%s9198_s1 + $0x578] sm:$0xff]  }
  0x85   :  { %6435 = vmatpush3.bf16.msra.mxu1 %v7087_v27  ;;  %6414 = vmatprep.subr.bf16.mxu0 %v7088_v28  ;;  %v7149_v27 = vld [vmem:[%s9198_s1 + $0x5f8] sm:$0xff]  }
  0x86   :  { %6436 = vmatprep.subr.bf16.mxu1 %v7089_v29  ;;  %4726 = vmatprep.mubr.bf16.mxu0 %v5677_v58  ;;  %v7150_v28 = vld [vmem:[%s9198_s1 + $0x538] sm:$0xff]   ;;  %v7178_v58 = vld [vmem:[%s9198_s1 + $0x628] sm:$0xff]  }
  0x87   :  { %4766 = vmatprep.mubr.bf16.mxu1 %v5679_v61  ;;  %v7151_v29 = vld [vmem:[%s9198_s1 + $0x5b8] sm:$0xff]   ;;  %v7181_v61 = vld [vmem:[%s9198_s1 + $0x6f0] sm:$0xff]  }
  0x88   :  { %6415 = vmatpush3.bf16.msra.mxu0 %v7090_v30  ;;  %v25_v30 = vld [vmem:[%s9199_s0 + $0x50] sm:$0xff] }
  0x89   :  { %6437 = vmatpush3.bf16.msra.mxu1 %v7091_v31  ;;  %6416 = vmatprep.subr.bf16.mxu0 %v7092_v32  ;;  %v26_v31 = vld [vmem:[%s9199_s0 + $0x58] sm:$0xff]  ;;  %v5680_v32 = vcombine.low %v25_v30, %v25_v30 }
  0x8a   :  { %6438 = vmatprep.subr.bf16.mxu1 %v7093_v33  ;;  %v5681_v33 = vcombine.high %v25_v30, %v25_v30  ;;  %v7211_v30 = vld [vmem:[%s9198_s1 + $0x7a0] sm:$0xff]  }
  0x8c   :  { %6417 = vmatpush3.bf16.msra.mxu0 %v7094_v34  ;;  %v5682_v34 = vcombine.low %v26_v31, %v26_v31 }
  0x8d   :  { %6439 = vmatpush3.bf16.msra.mxu1 %v7095_v35  ;;  %6418 = vmatprep.subr.bf16.mxu0 %v7096_v36  ;;  %v5683_v35 = vcombine.high %v26_v31, %v26_v31  ;;  %v7156_v36 = vld [vmem:[%s9198_s1 + $0x640] sm:$0xff]  }
  0x8e   :  { %6440 = vmatprep.subr.bf16.mxu1 %v7097_v37  ;;  %v7157_v37 = vld [vmem:[%s9198_s1 + $0x6c0] sm:$0xff]  }
  0x90   :  { %6419 = vmatpush3.bf16.msra.mxu0 %v7098_v38  ;;  %v7158_v38 = vld [vmem:[%s9198_s1 + $0x600] sm:$0xff]  }
  0x91   :  { %6441 = vmatpush3.bf16.msra.mxu1 %v7099_v39  ;;  %6420 = vmatprep.subr.bf16.mxu0 %v7100_v40  ;;  %v7159_v39 = vld [vmem:[%s9198_s1 + $0x680] sm:$0xff]   ;;  %v7160_v40 = vld [vmem:[%s9198_s1 + $0x648] sm:$0xff]  }
  0x92   :  { %6442 = vmatprep.subr.bf16.mxu1 %v7101_v41  ;;  %v7161_v41 = vld [vmem:[%s9198_s1 + $0x6c8] sm:$0xff]  }
  0x94   :  { %6421 = vmatpush3.bf16.msra.mxu0 %v7102_v42  ;;  %v7162_v42 = vld [vmem:[%s9198_s1 + $0x608] sm:$0xff]  }
  0x95   :  { %6443 = vmatpush3.bf16.msra.mxu1 %v7103_v43  ;;  %6422 = vmatprep.subr.bf16.mxu0 %v7104_v44  ;;  %v7163_v43 = vld [vmem:[%s9198_s1 + $0x688] sm:$0xff]   ;;  %v7164_v44 = vld [vmem:[%s9198_s1 + $0x650] sm:$0xff]  }
  0x96   :  { %6444 = vmatprep.subr.bf16.mxu1 %v7105_v45  ;;  %v7165_v45 = vld [vmem:[%s9198_s1 + $0x6d0] sm:$0xff]  }
  0x98   :  { %6423 = vmatpush3.bf16.msra.mxu0 %v7106_v46  ;;  %v7166_v46 = vld [vmem:[%s9198_s1 + $0x610] sm:$0xff]  }
  0x99   :  { %6445 = vmatpush3.bf16.msra.mxu1 %v7107_v47  ;;  %6424 = vmatprep.subr.bf16.mxu0 %v7108_v48  ;;  %v7167_v47 = vld [vmem:[%s9198_s1 + $0x690] sm:$0xff]   ;;  %v7168_v48 = vld [vmem:[%s9198_s1 + $0x658] sm:$0xff]  }
  0x9a   :  { %6446 = vmatprep.subr.bf16.mxu1 %v7109_v49  ;;  %v7169_v49 = vld [vmem:[%s9198_s1 + $0x6d8] sm:$0xff]  }
  0x9c   :  { %6425 = vmatpush3.bf16.msra.mxu0 %v7110_v50  ;;  %v7170_v50 = vld [vmem:[%s9198_s1 + $0x618] sm:$0xff]  }
  0x9d   :  { %6447 = vmatpush3.bf16.msra.mxu1 %v7111_v51  ;;  %6426 = vmatprep.subr.bf16.mxu0 %v7112_v52  ;;  %v7171_v51 = vld [vmem:[%s9198_s1 + $0x698] sm:$0xff]   ;;  %v7172_v52 = vld [vmem:[%s9198_s1 + $0x660] sm:$0xff]  }
  0x9e   :  { %6448 = vmatprep.subr.bf16.mxu1 %v7113_v53  ;;  %v7173_v53 = vld [vmem:[%s9198_s1 + $0x6e0] sm:$0xff]  }
  0xa0   :  { %6427 = vmatpush3.bf16.msra.mxu0 %v7114_v54  ;;  %v7174_v54 = vld [vmem:[%s9198_s1 + $0x620] sm:$0xff]  }
  0xa1   :  { %6449 = vmatpush3.bf16.msra.mxu1 %v7115_v55  ;;  %6456 = vmatprep.subr.bf16.mxu0 %v7120_v62  ;;  %v7175_v55 = vld [vmem:[%s9198_s1 + $0x6a0] sm:$0xff]   ;;  %v7182_v62 = vld [vmem:[%s9198_s1 + $0x630] sm:$0xff]  }
  0xa2   :  { %6478 = vmatprep.subr.bf16.mxu1 %v7121_v63  ;;  %v7183_v63 = vld [vmem:[%s9198_s1 + $0x6b0] sm:$0xff]  }
  0xa3   :  { %4727 = vmatmul.mubr.bf16.vlgmr.msra.gmra.mrb[16].mxu0 %v5676_v57  ;;  %v7177_v57 = vld [vmem:[%s9198_s1 + $0x6e8] sm:$0xff]  }
  0xa4   :  { %4767 = vmatmul.mubr.bf16.vlgmr.msra.gmra.mrb[16].mxu1 %v5678_v60  ;;  %6457 = vmatpush3.bf16.msra.mxu0 %v7122_v0  ;;  %v7180_v60 = vld [vmem:[%s9198_s1 + $0x670] sm:$0xff]   ;;  %v7184_v0 = vld [vmem:[%s9198_s1 + $0x678] sm:$0xff]  }
  0xa5   :  { %6479 = vmatpush3.bf16.msra.mxu1 %v7123_v1  ;;  %6458 = vmatprep.subr.bf16.mxu0 %v7124_v2  ;;  %v7185_v1 = vld [vmem:[%s9198_s1 + $0x6f8] sm:$0xff]  }
  0xa6   :  { %6480 = vmatprep.subr.bf16.mxu1 %v7125_v3  ;;  %4806 = vmatprep.mubr.bf16.mxu0 %v5681_v33  ;;  %v7186_v2 = vld [vmem:[%s9198_s1 + $0x638] sm:$0xff]  }
  0xa7   :  { %4846 = vmatprep.mubr.bf16.mxu1 %v5683_v35  ;;  %v7187_v3 = vld [vmem:[%s9198_s1 + $0x6b8] sm:$0xff]  }
  0xa8   :  { %6459 = vmatpush3.bf16.msra.mxu0 %v7126_v4  ;;  %v27_v4 = vld [vmem:[%s9199_s0 + $0x60] sm:$0xff] }
  0xa9   :  { %6481 = vmatpush3.bf16.msra.mxu1 %v7127_v5  ;;  %6460 = vmatprep.subr.bf16.mxu0 %v7128_v6  ;;  %v28_v5 = vld [vmem:[%s9199_s0 + $0x68] sm:$0xff]  ;;  %v5684_v6 = vcombine.low %v27_v4, %v27_v4 }
  0xaa   :  { %6482 = vmatprep.subr.bf16.mxu1 %v7129_v7  ;;  %v5685_v7 = vcombine.high %v27_v4, %v27_v4  ;;  %v7235_v4 = vld [vmem:[%s9198_s1 + $0x888] sm:$0xff]  }
  0xac   :  { %6461 = vmatpush3.bf16.msra.mxu0 %v7130_v8  ;;  %v5686_v8 = vcombine.low %v28_v5, %v28_v5 }
  0xad   :  { %6483 = vmatpush3.bf16.msra.mxu1 %v7131_v9  ;;  %6462 = vmatprep.subr.bf16.mxu0 %v7132_v10  ;;  %v7192_v9 = vld [vmem:[%s9198_s1 + $0x740] sm:$0xff]   ;;  %v5687_v10 = vcombine.high %v28_v5, %v28_v5  ;;  %v7236_v5 = vld [vmem:[%s9198_s1 + $0x850] sm:$0xff]  }
  0xae   :  { %6484 = vmatprep.subr.bf16.mxu1 %v7133_v11  ;;  %v7193_v11 = vld [vmem:[%s9198_s1 + $0x7c0] sm:$0xff]  }
  0xb0   :  { %6463 = vmatpush3.bf16.msra.mxu0 %v7134_v12  ;;  %v7194_v12 = vld [vmem:[%s9198_s1 + $0x700] sm:$0xff]  }
  0xb1   :  { %6485 = vmatpush3.bf16.msra.mxu1 %v7135_v13  ;;  %6464 = vmatprep.subr.bf16.mxu0 %v7136_v14  ;;  %v7195_v13 = vld [vmem:[%s9198_s1 + $0x780] sm:$0xff]   ;;  %v7196_v14 = vld [vmem:[%s9198_s1 + $0x748] sm:$0xff]  }
  0xb2   :  { %6486 = vmatprep.subr.bf16.mxu1 %v7137_v15  ;;  %v7197_v15 = vld [vmem:[%s9198_s1 + $0x7c8] sm:$0xff]  }
  0xb4   :  { %6465 = vmatpush3.bf16.msra.mxu0 %v7138_v16  ;;  %v7198_v16 = vld [vmem:[%s9198_s1 + $0x708] sm:$0xff]  }
  0xb5   :  { %6487 = vmatpush3.bf16.msra.mxu1 %v7139_v17  ;;  %6466 = vmatprep.subr.bf16.mxu0 %v7140_v18  ;;  %v7199_v17 = vld [vmem:[%s9198_s1 + $0x788] sm:$0xff]   ;;  %v7200_v18 = vld [vmem:[%s9198_s1 + $0x750] sm:$0xff]  }
  0xb6   :  { %6488 = vmatprep.subr.bf16.mxu1 %v7141_v19  ;;  %v7201_v19 = vld [vmem:[%s9198_s1 + $0x7d0] sm:$0xff]  }
  0xb8   :  { %6467 = vmatpush3.bf16.msra.mxu0 %v7142_v20  ;;  %v7202_v20 = vld [vmem:[%s9198_s1 + $0x710] sm:$0xff]  }
  0xb9   :  { %6489 = vmatpush3.bf16.msra.mxu1 %v7143_v21  ;;  %6468 = vmatprep.subr.bf16.mxu0 %v7144_v22  ;;  %v7203_v21 = vld [vmem:[%s9198_s1 + $0x790] sm:$0xff]   ;;  %v7204_v22 = vld [vmem:[%s9198_s1 + $0x758] sm:$0xff]  }
  0xba   :  { %6490 = vmatprep.subr.bf16.mxu1 %v7145_v23  ;;  %v7205_v23 = vld [vmem:[%s9198_s1 + $0x7d8] sm:$0xff]  }
  0xbc   :  { %6469 = vmatpush3.bf16.msra.mxu0 %v7146_v24  ;;  %v7206_v24 = vld [vmem:[%s9198_s1 + $0x718] sm:$0xff]  }
  0xbd   :  { %6491 = vmatpush3.bf16.msra.mxu1 %v7147_v25  ;;  %6470 = vmatprep.subr.bf16.mxu0 %v7148_v26  ;;  %v7207_v25 = vld [vmem:[%s9198_s1 + $0x798] sm:$0xff]   ;;  %v7208_v26 = vld [vmem:[%s9198_s1 + $0x760] sm:$0xff]  }
  0xbe   :  { %6492 = vmatprep.subr.bf16.mxu1 %v7149_v27  ;;  %v7209_v27 = vld [vmem:[%s9198_s1 + $0x7e0] sm:$0xff]  }
  0xc0   :  { %6471 = vmatpush3.bf16.msra.mxu0 %v7150_v28  ;;  %v7210_v28 = vld [vmem:[%s9198_s1 + $0x720] sm:$0xff]  }
  0xc1   :  { %6493 = vmatpush3.bf16.msra.mxu1 %v7151_v29  ;;  %6500 = vmatprep.subr.bf16.mxu0 %v7156_v36 }
  0xc2   :  { %6522 = vmatprep.subr.bf16.mxu1 %v7157_v37  ;;  %v7212_v37 = vld [vmem:[%s9198_s1 + $0x768] sm:$0xff]  }
  0xc3   :  { %4807 = vmatmul.mubr.bf16.vlgmr.msra.gmra.mrb[20].mxu0 %v5680_v32  ;;  %v5659_v32 = vld [vmem:[%s9200_s2] ss:$0 sm:$0xff] }
  0xc4   :  { %4847 = vmatmul.mubr.bf16.vlgmr.msra.gmra.mrb[20].mxu1 %v5682_v34  ;;  %6501 = vmatpush3.bf16.msra.mxu0 %v7158_v38 }
  0xc5   :  { %6523 = vmatpush3.bf16.msra.mxu1 %v7159_v39  ;;  %6502 = vmatprep.subr.bf16.mxu0 %v7160_v40  ;;  %v7213_v39 = vld [vmem:[%s9198_s1 + $0x7e8] sm:$0xff]  }
  0xc6   :  { %6524 = vmatprep.subr.bf16.mxu1 %v7161_v41  ;;  %4886 = vmatprep.mubr.bf16.mxu0 %v5685_v7  ;;  %v7238_v7 = vld [vmem:[%s9198_s1 + $0x810] sm:$0xff]  }
  0xc7   :  { %4926 = vmatprep.mubr.bf16.mxu1 %v5687_v10  ;;  %v7241_v10 = vld [vmem:[%s9198_s1 + $0x8d8] sm:$0xff]  }
  0xc8   :  { %6503 = vmatpush3.bf16.msra.mxu0 %v7162_v42  ;;  %v7214_v42 = vld [vmem:[%s9198_s1 + $0x728] sm:$0xff]  }
  0xc9   :  { %6525 = vmatpush3.bf16.msra.mxu1 %v7163_v43  ;;  %6504 = vmatprep.subr.bf16.mxu0 %v7164_v44  ;;  %v7215_v44 = vld [vmem:[%s9198_s1 + $0x7a8] sm:$0xff]  }
  0xca   :  { %6526 = vmatprep.subr.bf16.mxu1 %v7165_v45 }
  0xcc   :  { %6505 = vmatpush3.bf16.msra.mxu0 %v7166_v46 }
  0xcd   :  { %6527 = vmatpush3.bf16.msra.mxu1 %v7167_v47  ;;  %6506 = vmatprep.subr.bf16.mxu0 %v7168_v48  ;;  %v7216_v47 = vld [vmem:[%s9198_s1 + $0x770] sm:$0xff]  }
  0xce   :  { %6528 = vmatprep.subr.bf16.mxu1 %v7169_v49  ;;  %v7217_v48 = vld [vmem:[%s9198_s1 + $0x7f0] sm:$0xff]  }
  0xcf   :  { %v7218_v49 = vld [vmem:[%s9198_s1 + $0x730] sm:$0xff]  }
  0xd0   :  { %6507 = vmatpush3.bf16.msra.mxu0 %v7170_v50  ;;  %v7219_v50 = vld [vmem:[%s9198_s1 + $0x7b0] sm:$0xff]  }
  0xd1   :  { %6529 = vmatpush3.bf16.msra.mxu1 %v7171_v51  ;;  %6508 = vmatprep.subr.bf16.mxu0 %v7172_v52  ;;  %v7220_v51 = vld [vmem:[%s9198_s1 + $0x778] sm:$0xff]  }
  0xd2   :  { %6530 = vmatprep.subr.bf16.mxu1 %v7173_v53  ;;  %v7221_v52 = vld [vmem:[%s9198_s1 + $0x7f8] sm:$0xff]  }
  0xd3   :  { %v7222_v53 = vld [vmem:[%s9198_s1 + $0x738] sm:$0xff]  }
  0xd4   :  { %6509 = vmatpush3.bf16.msra.mxu0 %v7174_v54  ;;  %v7223_v54 = vld [vmem:[%s9198_s1 + $0x7b8] sm:$0xff]  }
  0xd5   :  { %6531 = vmatpush3.bf16.msra.mxu1 %v7175_v55  ;;  %6510 = vmatprep.subr.bf16.mxu0 %v7176_v56  ;;  %v29_v55 = vld [vmem:[%s9199_s0 + $0x70] sm:$0xff]  ;;  %v30_v56 = vld [vmem:[%s9199_s0 + $0x78] sm:$0xff] }
  0xd6   :  { %6532 = vmatprep.subr.bf16.mxu1 %v7177_v57  ;;  %v5688_v57 = vcombine.low %v29_v55, %v29_v55 }
  0xd8   :  { %6511 = vmatpush3.bf16.msra.mxu0 %v7178_v58  ;;  %v5689_v58 = vcombine.high %v29_v55, %v29_v55  ;;  %v7272_v55 = vld [vmem:[%s9198_s1 + $0x950] sm:$0xff]  }
  0xd9   :  { %6533 = vmatpush3.bf16.msra.mxu1 %v7179_v59  ;;  %6512 = vmatprep.subr.bf16.mxu0 %v7180_v60  ;;  %v5690_v59 = vcombine.low %v30_v56, %v30_v56  ;;  %v5691_v60 = vcombine.high %v30_v56, %v30_v56  ;;  %v7273_v56 = vld [vmem:[%s9198_s1 + $0x9d0] sm:$0xff]  }
  0xda   :  { %6534 = vmatprep.subr.bf16.mxu1 %v7181_v61  ;;  %v7228_v61 = vld [vmem:[%s9198_s1 + $0x840] sm:$0xff]  }
  0xdc   :  { %6513 = vmatpush3.bf16.msra.mxu0 %v7182_v62  ;;  %v7229_v62 = vld [vmem:[%s9198_s1 + $0x8c0] sm:$0xff]  }
  0xdd   :  { %6535 = vmatpush3.bf16.msra.mxu1 %v7183_v63  ;;  %6514 = vmatprep.subr.bf16.mxu0 %v7184_v0  ;;  %v7230_v63 = vld [vmem:[%s9198_s1 + $0x800] sm:$0xff]  }
  0xde   :  { %6536 = vmatprep.subr.bf16.mxu1 %v7185_v1  ;;  %v7231_v0 = vld [vmem:[%s9198_s1 + $0x880] sm:$0xff]   ;;  %v7232_v1 = vld [vmem:[%s9198_s1 + $0x848] sm:$0xff]  }
  0xe0   :  { %6515 = vmatpush3.bf16.msra.mxu0 %v7186_v2  ;;  %v7233_v2 = vld [vmem:[%s9198_s1 + $0x8c8] sm:$0xff]  }
  0xe1   :  { %6537 = vmatpush3.bf16.msra.mxu1 %v7187_v3  ;;  %6544 = vmatprep.subr.bf16.mxu0 %v7192_v9  ;;  %v7234_v3 = vld [vmem:[%s9198_s1 + $0x808] sm:$0xff]   ;;  %v7240_v9 = vld [vmem:[%s9198_s1 + $0x858] sm:$0xff]  }
  0xe2   :  { %6566 = vmatprep.subr.bf16.mxu1 %v7193_v11  ;;  %v7242_v11 = vld [vmem:[%s9198_s1 + $0x818] sm:$0xff]  }
  0xe3   :  { %4887 = vmatmul.mubr.bf16.vlgmr.msra.gmra.mrb[24].mxu0 %v5684_v6  ;;  %v7237_v6 = vld [vmem:[%s9198_s1 + $0x8d0] sm:$0xff]  }
  0xe4   :  { %4927 = vmatmul.mubr.bf16.vlgmr.msra.gmra.mrb[24].mxu1 %v5686_v8  ;;  %6545 = vmatpush3.bf16.msra.mxu0 %v7194_v12  ;;  %v7239_v8 = vld [vmem:[%s9198_s1 + $0x890] sm:$0xff]   ;;  %v7243_v12 = vld [vmem:[%s9198_s1 + $0x898] sm:$0xff]  }
  0xe5   :  { %6567 = vmatpush3.bf16.msra.mxu1 %v7195_v13  ;;  %6546 = vmatprep.subr.bf16.mxu0 %v7196_v14  ;;  %v7244_v13 = vld [vmem:[%s9198_s1 + $0x860] sm:$0xff]  }
  0xe6   :  { %6568 = vmatprep.subr.bf16.mxu1 %v7197_v15  ;;  %4966 = vmatprep.mubr.bf16.mxu0 %v5689_v58  ;;  %v7245_v14 = vld [vmem:[%s9198_s1 + $0x8e0] sm:$0xff]   ;;  %v7275_v58 = vld [vmem:[%s9198_s1 + $0x990] sm:$0xff]  }
  0xe7   :  { %5006 = vmatprep.mubr.bf16.mxu1 %v5691_v60  ;;  %v7246_v15 = vld [vmem:[%s9198_s1 + $0x820] sm:$0xff]   ;;  %v7277_v60 = vld [vmem:[%s9198_s1 + $0x9d8] sm:$0xff]  }
  0xe8   :  { %6547 = vmatpush3.bf16.msra.mxu0 %v7198_v16 }
  0xe9   :  { %6569 = vmatpush3.bf16.msra.mxu1 %v7199_v17  ;;  %6548 = vmatprep.subr.bf16.mxu0 %v7200_v18  ;;  %v7247_v17 = vld [vmem:[%s9198_s1 + $0x8a0] sm:$0xff]  }
  0xea   :  { %6570 = vmatprep.subr.bf16.mxu1 %v7201_v19 }
  0xec   :  { %6549 = vmatpush3.bf16.msra.mxu0 %v7202_v20 }
  0xed   :  { %6571 = vmatpush3.bf16.msra.mxu1 %v7203_v21  ;;  %6550 = vmatprep.subr.bf16.mxu0 %v7204_v22 }
  0xee   :  { %6572 = vmatprep.subr.bf16.mxu1 %v7205_v23  ;;  %v7248_v23 = vld [vmem:[%s9198_s1 + $0x868] sm:$0xff]  }
  0xf0   :  { %6551 = vmatpush3.bf16.msra.mxu0 %v7206_v24 }
  0xf1   :  { %6573 = vmatpush3.bf16.msra.mxu1 %v7207_v25  ;;  %6552 = vmatprep.subr.bf16.mxu0 %v7208_v26  ;;  %v7249_v25 = vld [vmem:[%s9198_s1 + $0x8e8] sm:$0xff]  }
  0xf2   :  { %6574 = vmatprep.subr.bf16.mxu1 %v7209_v27 }
  0xf4   :  { %6553 = vmatpush3.bf16.msra.mxu0 %v7210_v28  ;;  %v7250_v28 = vld [vmem:[%s9198_s1 + $0x828] sm:$0xff]  }
  0xf5   :  { %6575 = vmatpush3.bf16.msra.mxu1 %v7211_v30  ;;  %6554 = vmatprep.subr.bf16.mxu0 %v7212_v37  ;;  %v7251_v30 = vld [vmem:[%s9198_s1 + $0x8a8] sm:$0xff]   ;;  %v7256_v37 = vld [vmem:[%s9198_s1 + $0x878] sm:$0xff]  }
  0xf6   :  { %v6252_v29 = vpop.f32.mrb[0].mxu0  ;;  %6576 = vmatprep.subr.bf16.mxu1 %v7213_v39  ;;  %v7258_v39 = vld [vmem:[%s9198_s1 + $0x838] sm:$0xff]  }
  0xf7   :  { %v6274_v31 = vpop.f32.mrb[0].mxu1  ;;  %v6253_v33 = vpop.f32.mrb[1].mxu0 }
  0xf8   :  { %v6275_v34 = vpop.f32.mrb[1].mxu1  ;;  %v6254_v35 = vadd.f32 %v6253_v33, %v6252_v29  ;;  %v6255_v38 = vpop.f32.mrb[2].mxu0  ;;  %6555 = vmatpush3.bf16.msra.mxu0 %v7214_v42  ;;  %v7252_v33 = vld [vmem:[%s9198_s1 + $0x870] sm:$0xff]   ;;  %v32_v42 = vld [vmem:[%s9199_s0 + $0x88] sm:$0xff] }
  0xf9   :  { %v6276_v36 = vadd.f32 %v6275_v34, %v6274_v31  ;;  %v6277_v40 = vpop.f32.mrb[2].mxu1  ;;  %v6256_v43 = vpop.f32.mrb[3].mxu0  ;;  %6577 = vmatpush3.bf16.msra.mxu1 %v7215_v44  ;;  %6556 = vmatprep.subr.bf16.mxu0 %v7216_v47  ;;  %v7253_v34 = vld [vmem:[%s9198_s1 + $0x8f0] sm:$0xff]   ;;  %v7257_v38 = vld [vmem:[%s9198_s1 + $0x8f8] sm:$0xff]   ;;  %v7264_v47 = vld [vmem:[%s9198_s1 + $0x940] sm:$0xff]  }
  0xfa   :  { %v4409_v41 = vadd.f32 %v6254_v35, %v5659_v32  ;;  %v6278_v45 = vpop.f32.mrb[3].mxu1  ;;  %6578 = vmatprep.subr.bf16.mxu1 %v7217_v48  ;;  %v7254_v35 = vld [vmem:[%s9198_s1 + $0x830] sm:$0xff]   ;;  %v7259_v40 = vld [vmem:[%s9198_s1 + $0x8b8] sm:$0xff]   ;;  %v7265_v48 = vld [vmem:[%s9198_s1 + $0x9c0] sm:$0xff]  }
  0xfb   :  { %v5694_v45 = vcombine.low %v32_v42, %v32_v42 }
  0xfc   :  { %v8325_v46 = vadd.f32 %v6276_v36, %v4409_v41  ;;  %6557 = vmatpush3.bf16.msra.mxu0 %v7218_v49  ;;  %v7255_v36 = vld [vmem:[%s9198_s1 + $0x8b0] sm:$0xff]   ;;  %v31_v41 = vld [vmem:[%s9199_s0 + $0x80] sm:$0xff] }
  0xfd   :  { %6579 = vmatpush3.bf16.msra.mxu1 %v7219_v50  ;;  %6558 = vmatprep.subr.bf16.mxu0 %v7220_v51  ;;  %v5692_v43 = vcombine.low %v31_v41, %v31_v41  ;;  %v5693_v44 = vcombine.high %v31_v41, %v31_v41  ;;  %v7266_v49 = vld [vmem:[%s9198_s1 + $0x900] sm:$0xff]   ;;  %v7268_v51 = vld [vmem:[%s9198_s1 + $0x948] sm:$0xff]   ;;  %v7308_v41 = vld [vmem:[%s9198_s1 + $0xa50] sm:$0xff]  }
  0xfe   :  { %6580 = vmatprep.subr.bf16.mxu1 %v7221_v52  ;;  %v7267_v50 = vld [vmem:[%s9198_s1 + $0x980] sm:$0xff]   ;;  %v7269_v52 = vld [vmem:[%s9198_s1 + $0x9c8] sm:$0xff]  }
 0x100   :  { %6559 = vmatpush3.bf16.msra.mxu0 %v7222_v53  ;;  %v7270_v53 = vld [vmem:[%s9198_s1 + $0x908] sm:$0xff]  }
 0x101   :  { %6581 = vmatpush3.bf16.msra.mxu1 %v7223_v54  ;;  %6588 = vmatprep.subr.bf16.mxu0 %v7228_v61  ;;  %v7271_v54 = vld [vmem:[%s9198_s1 + $0x988] sm:$0xff]   ;;  %v7278_v61 = vld [vmem:[%s9198_s1 + $0x918] sm:$0xff]  }
 0x102   :  { %6610 = vmatprep.subr.bf16.mxu1 %v7229_v62  ;;  %v7279_v62 = vld [vmem:[%s9198_s1 + $0x998] sm:$0xff]  }
 0x103   :  { %4967 = vmatmul.mubr.bf16.vlgmr.msra.gmra.mrb[28].mxu0 %v5688_v57  ;;  %v7274_v57 = vld [vmem:[%s9198_s1 + $0x910] sm:$0xff]  }
 0x104   :  { %5007 = vmatmul.mubr.bf16.vlgmr.msra.gmra.mrb[28].mxu1 %v5690_v59  ;;  %6589 = vmatpush3.bf16.msra.mxu0 %v7230_v63  ;;  %v7276_v59 = vld [vmem:[%s9198_s1 + $0x958] sm:$0xff]   ;;  %v7280_v63 = vld [vmem:[%s9198_s1 + $0x960] sm:$0xff]  }
 0x105   :  { %6611 = vmatpush3.bf16.msra.mxu1 %v7231_v0  ;;  %6590 = vmatprep.subr.bf16.mxu0 %v7232_v1  ;;  %v7281_v0 = vld [vmem:[%s9198_s1 + $0x9e0] sm:$0xff]  }
 0x106   :  { %6612 = vmatprep.subr.bf16.mxu1 %v7233_v2  ;;  %5046 = vmatprep.mubr.bf16.mxu0 %v5693_v44  ;;  %v7282_v2 = vld [vmem:[%s9198_s1 + $0x920] sm:$0xff]   ;;  %v7311_v44 = vld [vmem:[%s9198_s1 + $0xa90] sm:$0xff]  }
 0x108   :  { %6591 = vmatpush3.bf16.msra.mxu0 %v7234_v3 }
 0x109   :  { %6613 = vmatpush3.bf16.msra.mxu1 %v7235_v4  ;;  %6592 = vmatprep.subr.bf16.mxu0 %v7236_v5  ;;  %v7283_v4 = vld [vmem:[%s9198_s1 + $0x9a0] sm:$0xff]  }
 0x10a   :  { %6614 = vmatprep.subr.bf16.mxu1 %v7237_v6 }
 0x10c   :  { %6593 = vmatpush3.bf16.msra.mxu0 %v7238_v7 }
 0x10d   :  { %6615 = vmatpush3.bf16.msra.mxu1 %v7239_v8  ;;  %6594 = vmatprep.subr.bf16.mxu0 %v7240_v9  ;;  %v7284_v8 = vld [vmem:[%s9198_s1 + $0x968] sm:$0xff]  }
 0x10e   :  { %6616 = vmatprep.subr.bf16.mxu1 %v7241_v10  ;;  %v7285_v10 = vld [vmem:[%s9198_s1 + $0x9e8] sm:$0xff]  }
 0x110   :  { %6595 = vmatpush3.bf16.msra.mxu0 %v7242_v11 }
 0x111   :  { %6617 = vmatpush3.bf16.msra.mxu1 %v7243_v12  ;;  %6596 = vmatprep.subr.bf16.mxu0 %v7244_v13 }
 0x112   :  { %6618 = vmatprep.subr.bf16.mxu1 %v7245_v14  ;;  %v7286_v14 = vld [vmem:[%s9198_s1 + $0x928] sm:$0xff]  }
 0x114   :  { %6597 = vmatpush3.bf16.msra.mxu0 %v7246_v15  ;;  %v7287_v15 = vld [vmem:[%s9198_s1 + $0x9a8] sm:$0xff]  }
 0x115   :  { %6619 = vmatpush3.bf16.msra.mxu1 %v7247_v17  ;;  %6598 = vmatprep.subr.bf16.mxu0 %v7248_v23  ;;  %v7292_v23 = vld [vmem:[%s9198_s1 + $0x978] sm:$0xff]  }
 0x116   :  { %v6296_v16 = vpop.f32.mrb[4].mxu0  ;;  %6620 = vmatprep.subr.bf16.mxu1 %v7249_v25  ;;  %v7294_v25 = vld [vmem:[%s9198_s1 + $0x938] sm:$0xff]  }
 0x117   :  { %v6318_v18 = vpop.f32.mrb[4].mxu1  ;;  %v6297_v19 = vpop.f32.mrb[5].mxu0 }
 0x118   :  { %v6319_v20 = vpop.f32.mrb[5].mxu1  ;;  %v6298_v21 = vadd.f32 %v6297_v19, %v6296_v16  ;;  %v6299_v24 = vpop.f32.mrb[6].mxu0  ;;  %6599 = vmatpush3.bf16.msra.mxu0 %v7250_v28  ;;  %v7288_v19 = vld [vmem:[%s9198_s1 + $0x970] sm:$0xff]   ;;  %v34_v28 = vld [vmem:[%s9199_s0 + $0x98] sm:$0xff] }
 0x119   :  { %v6320_v22 = vadd.f32 %v6319_v20, %v6318_v18  ;;  %v6321_v26 = vpop.f32.mrb[6].mxu1  ;;  %v6300_v29 = vpop.f32.mrb[7].mxu0  ;;  %6621 = vmatpush3.bf16.msra.mxu1 %v7251_v30  ;;  %6600 = vmatprep.subr.bf16.mxu0 %v7252_v33  ;;  %v7289_v20 = vld [vmem:[%s9198_s1 + $0x9f0] sm:$0xff]   ;;  %v7293_v24 = vld [vmem:[%s9198_s1 + $0x9f8] sm:$0xff]   ;;  %v5699_v33 = vcombine.high %v34_v28, %v34_v28 }
 0x11a   :  { %v4489_v27 = vadd.f32 %v6298_v21, %v8325_v46  ;;  %v6322_v31 = vpop.f32.mrb[7].mxu1  ;;  %6622 = vmatprep.subr.bf16.mxu1 %v7253_v34  ;;  %v5695_v46 = vcombine.high %v32_v42, %v32_v42  ;;  %v7290_v21 = vld [vmem:[%s9198_s1 + $0x930] sm:$0xff]   ;;  %v7295_v26 = vld [vmem:[%s9198_s1 + $0x9b8] sm:$0xff]   ;;  %v7301_v34 = vld [vmem:[%s9198_s1 + $0xac0] sm:$0xff]  }
 0x11b   :  { %v5698_v31 = vcombine.low %v34_v28, %v34_v28  ;;  %v7309_v42 = vld [vmem:[%s9198_s1 + $0xad0] sm:$0xff]  }
 0x11c   :  { %v8430_v32 = vadd.f32 %v6320_v22, %v4489_v27  ;;  %6601 = vmatpush3.bf16.msra.mxu0 %v7254_v35  ;;  %5086 = vmatprep.mubr.bf16.mxu1 %v5695_v46  ;;  %v7291_v22 = vld [vmem:[%s9198_s1 + $0x9b0] sm:$0xff]   ;;  %v7302_v35 = vld [vmem:[%s9198_s1 + $0xa00] sm:$0xff]   ;;  %v7313_v46 = vld [vmem:[%s9198_s1 + $0xad8] sm:$0xff]  }
 0x11d   :  { %6623 = vmatpush3.bf16.msra.mxu1 %v7255_v36  ;;  %6602 = vmatprep.subr.bf16.mxu0 %v7256_v37  ;;  %v33_v27 = vld [vmem:[%s9199_s0 + $0x90] sm:$0xff]  ;;  %v7303_v36 = vld [vmem:[%s9198_s1 + $0xa80] sm:$0xff]   ;;  %v7304_v37 = vld [vmem:[%s9198_s1 + $0xa48] sm:$0xff]  }
 0x11e   :  { %6624 = vmatprep.subr.bf16.mxu1 %v7257_v38  ;;  %v5696_v29 = vcombine.low %v33_v27, %v33_v27  ;;  %v5697_v30 = vcombine.high %v33_v27, %v33_v27  ;;  %v7305_v38 = vld [vmem:[%s9198_s1 + $0xac8] sm:$0xff]   ;;  %v7344_v27 = vld [vmem:[%s9198_s1 + $0xb50] sm:$0xff]  }
 0x11f   :  { %v7345_v28 = vld [vmem:[%s9198_s1 + $0xbd0] sm:$0xff]  }
 0x120   :  { %6603 = vmatpush3.bf16.msra.mxu0 %v7258_v39  ;;  %v7306_v39 = vld [vmem:[%s9198_s1 + $0xa08] sm:$0xff]  }
 0x121   :  { %6625 = vmatpush3.bf16.msra.mxu1 %v7259_v40  ;;  %6632 = vmatprep.subr.bf16.mxu0 %v7264_v47  ;;  %v7307_v40 = vld [vmem:[%s9198_s1 + $0xa88] sm:$0xff]   ;;  %v7314_v47 = vld [vmem:[%s9198_s1 + $0xa18] sm:$0xff]  }
 0x122   :  { %6654 = vmatprep.subr.bf16.mxu1 %v7265_v48  ;;  %v7315_v48 = vld [vmem:[%s9198_s1 + $0xa98] sm:$0xff]  }
 0x123   :  { %5047 = vmatmul.mubr.bf16.vlgmr.msra.gmra.mrb[32].mxu0 %v5692_v43  ;;  %v7310_v43 = vld [vmem:[%s9198_s1 + $0xa10] sm:$0xff]  }
 0x124   :  { %5087 = vmatmul.mubr.bf16.vlgmr.msra.gmra.mrb[32].mxu1 %v5694_v45  ;;  %6633 = vmatpush3.bf16.msra.mxu0 %v7266_v49  ;;  %v7312_v45 = vld [vmem:[%s9198_s1 + $0xa58] sm:$0xff]   ;;  %v7316_v49 = vld [vmem:[%s9198_s1 + $0xa60] sm:$0xff]  }
 0x125   :  { %6655 = vmatpush3.bf16.msra.mxu1 %v7267_v50  ;;  %6634 = vmatprep.subr.bf16.mxu0 %v7268_v51  ;;  %v7317_v50 = vld [vmem:[%s9198_s1 + $0xae0] sm:$0xff]  }
 0x126   :  { %6656 = vmatprep.subr.bf16.mxu1 %v7269_v52  ;;  %5126 = vmatprep.mubr.bf16.mxu0 %v5697_v30  ;;  %v7318_v52 = vld [vmem:[%s9198_s1 + $0xa20] sm:$0xff]   ;;  %v7347_v30 = vld [vmem:[%s9198_s1 + $0xb90] sm:$0xff]  }
 0x127   :  { %5166 = vmatprep.mubr.bf16.mxu1 %v5699_v33  ;;  %v7350_v33 = vld [vmem:[%s9198_s1 + $0xb18] sm:$0xff]  }
 0x128   :  { %6635 = vmatpush3.bf16.msra.mxu0 %v7270_v53 }
 0x129   :  { %6657 = vmatpush3.bf16.msra.mxu1 %v7271_v54  ;;  %6636 = vmatprep.subr.bf16.mxu0 %v7272_v55  ;;  %v7319_v54 = vld [vmem:[%s9198_s1 + $0xaa0] sm:$0xff]  }
 0x12a   :  { %6658 = vmatprep.subr.bf16.mxu1 %v7273_v56 }
 0x12c   :  { %6637 = vmatpush3.bf16.msra.mxu0 %v7274_v57  ;;  %v7320_v57 = vld [vmem:[%s9198_s1 + $0xa68] sm:$0xff]  }
 0x12d   :  { %6659 = vmatpush3.bf16.msra.mxu1 %v7275_v58  ;;  %6638 = vmatprep.subr.bf16.mxu0 %v7276_v59 }
 0x12e   :  { %6660 = vmatprep.subr.bf16.mxu1 %v7277_v60  ;;  %v7321_v60 = vld [vmem:[%s9198_s1 + $0xae8] sm:$0xff]  }
 0x130   :  { %6639 = vmatpush3.bf16.msra.mxu0 %v7278_v61 }
 0x131   :  { %6661 = vmatpush3.bf16.msra.mxu1 %v7279_v62  ;;  %6640 = vmatprep.subr.bf16.mxu0 %v7280_v63  ;;  %v7322_v63 = vld [vmem:[%s9198_s1 + $0xa28] sm:$0xff]  }
 0x132   :  { %6662 = vmatprep.subr.bf16.mxu1 %v7281_v0 }
 0x134   :  { %6641 = vmatpush3.bf16.msra.mxu0 %v7282_v2 }
 0x135   :  { %6663 = vmatpush3.bf16.msra.mxu1 %v7283_v4  ;;  %6642 = vmatprep.subr.bf16.mxu0 %v7284_v8  ;;  %v7324_v4 = vld [vmem:[%s9198_s1 + $0xa70] sm:$0xff]  }
 0x136   :  { %v6340_v1 = vpop.f32.mrb[8].mxu0  ;;  %6664 = vmatprep.subr.bf16.mxu1 %v7285_v10  ;;  %v7327_v8 = vld [vmem:[%s9198_s1 + $0xab0] sm:$0xff]   ;;  %v7329_v10 = vld [vmem:[%s9198_s1 + $0xaf8] sm:$0xff]  }
 0x137   :  { %v6362_v3 = vpop.f32.mrb[8].mxu1  ;;  %v6341_v5 = vpop.f32.mrb[9].mxu0 }
 0x138   :  { %v6342_v6 = vadd.f32 %v6341_v5, %v6340_v1  ;;  %v6363_v7 = vpop.f32.mrb[9].mxu1  ;;  %v6343_v11 = vpop.f32.mrb[10].mxu0  ;;  %6643 = vmatpush3.bf16.msra.mxu0 %v7286_v14  ;;  %v7323_v1 = vld [vmem:[%s9198_s1 + $0xaa8] sm:$0xff]  }
 0x139   :  { %v6364_v9 = vadd.f32 %v6363_v7, %v6362_v3  ;;  %v6365_v13 = vpop.f32.mrb[10].mxu1  ;;  %v6344_v16 = vpop.f32.mrb[11].mxu0  ;;  %6665 = vmatpush3.bf16.msra.mxu1 %v7287_v15  ;;  %6644 = vmatprep.subr.bf16.mxu0 %v7288_v19  ;;  %v7326_v7 = vld [vmem:[%s9198_s1 + $0xa30] sm:$0xff]   ;;  %v7330_v11 = vld [vmem:[%s9198_s1 + $0xa38] sm:$0xff]   ;;  %v7336_v19 = vld [vmem:[%s9198_s1 + $0xb40] sm:$0xff]  }
 0x13a   :  { %v4569_v12 = vadd.f32 %v6342_v6, %v8430_v32  ;;  %v6366_v18 = vpop.f32.mrb[11].mxu1  ;;  %6666 = vmatprep.subr.bf16.mxu1 %v7289_v20  ;;  %v7300_v32 = vld [vmem:[%s9198_s1 + $0xa40] sm:$0xff]   ;;  %v7325_v6 = vld [vmem:[%s9198_s1 + $0xaf0] sm:$0xff]   ;;  %v36_v16 = vld [vmem:[%s9199_s0 + $0xa8] sm:$0xff] }
 0x13b   :  { %v35_v13 = vld [vmem:[%s9199_s0 + $0xa0] sm:$0xff]  ;;  %v5703_v18 = vcombine.high %v36_v16, %v36_v16 }
 0x13c   :  { %v8535_v17 = vadd.f32 %v6364_v9, %v4569_v12  ;;  %6645 = vmatpush3.bf16.msra.mxu0 %v7290_v21  ;;  %v7328_v9 = vld [vmem:[%s9198_s1 + $0xa78] sm:$0xff]   ;;  %v5700_v14 = vcombine.low %v35_v13, %v35_v13  ;;  %v5701_v15 = vcombine.high %v35_v13, %v35_v13  ;;  %v7337_v20 = vld [vmem:[%s9198_s1 + $0xbc0] sm:$0xff]   ;;  %v7380_v13 = vld [vmem:[%s9198_s1 + $0xc50] sm:$0xff]  }
 0x13d   :  { %6667 = vmatpush3.bf16.msra.mxu1 %v7291_v22  ;;  %6646 = vmatprep.subr.bf16.mxu0 %v7292_v23  ;;  %v7331_v12 = vld [vmem:[%s9198_s1 + $0xab8] sm:$0xff]   ;;  %v7338_v21 = vld [vmem:[%s9198_s1 + $0xb00] sm:$0xff]   ;;  %v7340_v23 = vld [vmem:[%s9198_s1 + $0xb48] sm:$0xff]  }
 0x13e   :  { %6668 = vmatprep.subr.bf16.mxu1 %v7293_v24  ;;  %v7339_v22 = vld [vmem:[%s9198_s1 + $0xb80] sm:$0xff]   ;;  %v7341_v24 = vld [vmem:[%s9198_s1 + $0xbc8] sm:$0xff]  }
 0x140   :  { %6647 = vmatpush3.bf16.msra.mxu0 %v7294_v25  ;;  %v7342_v25 = vld [vmem:[%s9198_s1 + $0xb08] sm:$0xff]  }
 0x141   :  { %6669 = vmatpush3.bf16.msra.mxu1 %v7295_v26  ;;  %6676 = vmatprep.subr.bf16.mxu0 %v7300_v32  ;;  %v7343_v26 = vld [vmem:[%s9198_s1 + $0xb88] sm:$0xff]   ;;  %v7349_v32 = vld [vmem:[%s9198_s1 + $0xbd8] sm:$0xff]  }
 0x142   :  { %6698 = vmatprep.subr.bf16.mxu1 %v7301_v34  ;;  %v7351_v34 = vld [vmem:[%s9198_s1 + $0xb98] sm:$0xff]  }
 0x143   :  { %5127 = vmatmul.mubr.bf16.vlgmr.msra.gmra.mrb[36].mxu0 %v5696_v29  ;;  %v7346_v29 = vld [vmem:[%s9198_s1 + $0xb10] sm:$0xff]  }
 0x144   :  { %5167 = vmatmul.mubr.bf16.vlgmr.msra.gmra.mrb[36].mxu1 %v5698_v31  ;;  %6677 = vmatpush3.bf16.msra.mxu0 %v7302_v35  ;;  %v7348_v31 = vld [vmem:[%s9198_s1 + $0xb58] sm:$0xff]   ;;  %v7352_v35 = vld [vmem:[%s9198_s1 + $0xb60] sm:$0xff]  }
 0x145   :  { %6699 = vmatpush3.bf16.msra.mxu1 %v7303_v36  ;;  %6678 = vmatprep.subr.bf16.mxu0 %v7304_v37  ;;  %v7353_v36 = vld [vmem:[%s9198_s1 + $0xbe0] sm:$0xff]  }
 0x146   :  { %6700 = vmatprep.subr.bf16.mxu1 %v7305_v38  ;;  %5206 = vmatprep.mubr.bf16.mxu0 %v5701_v15  ;;  %v7354_v38 = vld [vmem:[%s9198_s1 + $0xb20] sm:$0xff]   ;;  %v7382_v15 = vld [vmem:[%s9198_s1 + $0xc10] sm:$0xff]  }
 0x147   :  { %5246 = vmatprep.mubr.bf16.mxu1 %v5703_v18  ;;  %v7385_v18 = vld [vmem:[%s9198_s1 + $0xcd8] sm:$0xff]  }
 0x148   :  { %6679 = vmatpush3.bf16.msra.mxu0 %v7306_v39 }
 0x149   :  { %6701 = vmatpush3.bf16.msra.mxu1 %v7307_v40  ;;  %6680 = vmatprep.subr.bf16.mxu0 %v7308_v41  ;;  %v7355_v40 = vld [vmem:[%s9198_s1 + $0xba0] sm:$0xff]  }
 0x14a   :  { %6702 = vmatprep.subr.bf16.mxu1 %v7309_v42 }
 0x14c   :  { %6681 = vmatpush3.bf16.msra.mxu0 %v7310_v43  ;;  %v7356_v43 = vld [vmem:[%s9198_s1 + $0xb68] sm:$0xff]  }
 0x14d   :  { %6703 = vmatpush3.bf16.msra.mxu1 %v7311_v44  ;;  %6682 = vmatprep.subr.bf16.mxu0 %v7312_v45 }
 0x14e   :  { %6704 = vmatprep.subr.bf16.mxu1 %v7313_v46  ;;  %v7357_v46 = vld [vmem:[%s9198_s1 + $0xbe8] sm:$0xff]  }
 0x150   :  { %6683 = vmatpush3.bf16.msra.mxu0 %v7314_v47 }
 0x151   :  { %6705 = vmatpush3.bf16.msra.mxu1 %v7315_v48  ;;  %6684 = vmatprep.subr.bf16.mxu0 %v7316_v49  ;;  %v7358_v49 = vld [vmem:[%s9198_s1 + $0xb28] sm:$0xff]  }
 0x152   :  { %6706 = vmatprep.subr.bf16.mxu1 %v7317_v50 }
 0x154   :  { %6685 = vmatpush3.bf16.msra.mxu0 %v7318_v52 }
 0x155   :  { %6707 = vmatpush3.bf16.msra.mxu1 %v7319_v54  ;;  %6686 = vmatprep.subr.bf16.mxu0 %v7320_v57  ;;  %v7360_v54 = vld [vmem:[%s9198_s1 + $0xb70] sm:$0xff]  }
 0x156   :  { %v6384_v51 = vpop.f32.mrb[12].mxu0  ;;  %6708 = vmatprep.subr.bf16.mxu1 %v7321_v60  ;;  %v7362_v57 = vld [vmem:[%s9198_s1 + $0xb30] sm:$0xff]   ;;  %v7365_v60 = vld [vmem:[%s9198_s1 + $0xbf8] sm:$0xff]  }
 0x157   :  { %v6406_v53 = vpop.f32.mrb[12].mxu1  ;;  %v6385_v55 = vpop.f32.mrb[13].mxu0 }
 0x158   :  { %v6407_v56 = vpop.f32.mrb[13].mxu1  ;;  %v6386_v58 = vadd.f32 %v6385_v55, %v6384_v51  ;;  %v6387_v61 = vpop.f32.mrb[14].mxu0  ;;  %6687 = vmatpush3.bf16.msra.mxu0 %v7322_v63  ;;  %v7359_v51 = vld [vmem:[%s9198_s1 + $0xba8] sm:$0xff]   ;;  %v37_v63 = vld [vmem:[%s9199_s0 + $0xb0] sm:$0xff] }
 0x159   :  { %v6408_v59 = vadd.f32 %v6407_v56, %v6406_v53  ;;  %v6409_v62 = vpop.f32.mrb[14].mxu1  ;;  %v6388_v2 = vpop.f32.mrb[15].mxu0  ;;  %6709 = vmatpush3.bf16.msra.mxu1 %v7323_v1  ;;  %6688 = vmatprep.subr.bf16.mxu0 %v7324_v4  ;;  %v7361_v56 = vld [vmem:[%s9198_s1 + $0xbf0] sm:$0xff]   ;;  %v7366_v61 = vld [vmem:[%s9198_s1 + $0xb38] sm:$0xff]   ;;  %v5704_v1 = vcombine.low %v37_v63, %v37_v63 }
 0x15a   :  { %v4649_v0 = vadd.f32 %v6386_v58, %v8535_v17  ;;  %v6410_v3 = vpop.f32.mrb[15].mxu1  ;;  %6710 = vmatprep.subr.bf16.mxu1 %v7325_v6  ;;  %v5702_v17 = vcombine.low %v36_v16, %v36_v16  ;;  %v7363_v58 = vld [vmem:[%s9198_s1 + $0xbb0] sm:$0xff]   ;;  %v7367_v62 = vld [vmem:[%s9198_s1 + $0xbb8] sm:$0xff]   ;;  %v5705_v2 = vcombine.high %v37_v63, %v37_v63  ;;  %v7373_v6 = vld [vmem:[%s9198_s1 + $0xcc0] sm:$0xff]  }
 0x15b   :  { %v7383_v16 = vld [vmem:[%s9198_s1 + $0xc90] sm:$0xff]  }
 0x15c   :  { %v8643_v5 = vadd.f32 %v6408_v59, %v4649_v0  ;;  %6689 = vmatpush3.bf16.msra.mxu0 %v7326_v7  ;;  %v7364_v59 = vld [vmem:[%s9198_s1 + $0xb78] sm:$0xff]   ;;  %v7374_v7 = vld [vmem:[%s9198_s1 + $0xc00] sm:$0xff]   ;;  %v7416_v63 = vld [vmem:[%s9198_s1 + $0xd50] sm:$0xff]  }
 0x15d   :  { %6711 = vmatpush3.bf16.msra.mxu1 %v7327_v8  ;;  %6690 = vmatprep.subr.bf16.mxu0 %v7328_v9  ;;  %v38_v0 = vld [vmem:[%s9199_s0 + $0xb8] sm:$0xff]  ;;  %v7375_v8 = vld [vmem:[%s9198_s1 + $0xc80] sm:$0xff]   ;;  %v7376_v9 = vld [vmem:[%s9198_s1 + $0xc48] sm:$0xff]  }
 0x15e   :  { %6712 = vmatprep.subr.bf16.mxu1 %v7329_v10  ;;  %v5706_v3 = vcombine.low %v38_v0, %v38_v0  ;;  %v5707_v4 = vcombine.high %v38_v0, %v38_v0  ;;  %v7377_v10 = vld [vmem:[%s9198_s1 + $0xcc8] sm:$0xff]   ;;  %v7417_v0 = vld [vmem:[%s9198_s1 + $0xdd0] sm:$0xff]  }
 0x160   :  { %6691 = vmatpush3.bf16.msra.mxu0 %v7330_v11  ;;  %v7378_v11 = vld [vmem:[%s9198_s1 + $0xc08] sm:$0xff]  }
 0x161   :  { %6713 = vmatpush3.bf16.msra.mxu1 %v7331_v12  ;;  %6720 = vmatprep.subr.bf16.mxu0 %v7336_v19  ;;  %v7379_v12 = vld [vmem:[%s9198_s1 + $0xc88] sm:$0xff]   ;;  %v7386_v19 = vld [vmem:[%s9198_s1 + $0xc18] sm:$0xff]  }
 0x162   :  { %6742 = vmatprep.subr.bf16.mxu1 %v7337_v20  ;;  %v7387_v20 = vld [vmem:[%s9198_s1 + $0xc98] sm:$0xff]  }
 0x163   :  { %5207 = vmatmul.mubr.bf16.vlgmr.msra.gmra.mrb[40].mxu0 %v5700_v14  ;;  %v7381_v14 = vld [vmem:[%s9198_s1 + $0xcd0] sm:$0xff]  }
 0x164   :  { %5247 = vmatmul.mubr.bf16.vlgmr.msra.gmra.mrb[40].mxu1 %v5702_v17  ;;  %6721 = vmatpush3.bf16.msra.mxu0 %v7338_v21  ;;  %v7384_v17 = vld [vmem:[%s9198_s1 + $0xc58] sm:$0xff]   ;;  %v7388_v21 = vld [vmem:[%s9198_s1 + $0xc60] sm:$0xff]  }
 0x165   :  { %6743 = vmatpush3.bf16.msra.mxu1 %v7339_v22  ;;  %6722 = vmatprep.subr.bf16.mxu0 %v7340_v23  ;;  %v7389_v22 = vld [vmem:[%s9198_s1 + $0xce0] sm:$0xff]  }
 0x166   :  { %6744 = vmatprep.subr.bf16.mxu1 %v7341_v24  ;;  %5286 = vmatprep.mubr.bf16.mxu0 %v5705_v2  ;;  %v7390_v24 = vld [vmem:[%s9198_s1 + $0xc20] sm:$0xff]   ;;  %v7419_v2 = vld [vmem:[%s9198_s1 + $0xd90] sm:$0xff]  }
 0x167   :  { %5326 = vmatprep.mubr.bf16.mxu1 %v5707_v4  ;;  %v7421_v4 = vld [vmem:[%s9198_s1 + $0xdd8] sm:$0xff]  }
 0x168   :  { %6723 = vmatpush3.bf16.msra.mxu0 %v7342_v25 }
 0x169   :  { %6745 = vmatpush3.bf16.msra.mxu1 %v7343_v26  ;;  %6724 = vmatprep.subr.bf16.mxu0 %v7344_v27  ;;  %v7391_v26 = vld [vmem:[%s9198_s1 + $0xca0] sm:$0xff]  }
 0x16a   :  { %6746 = vmatprep.subr.bf16.mxu1 %v7345_v28 }
 0x16c   :  { %6725 = vmatpush3.bf16.msra.mxu0 %v7346_v29 }
 0x16d   :  { %6747 = vmatpush3.bf16.msra.mxu1 %v7347_v30  ;;  %6726 = vmatprep.subr.bf16.mxu0 %v7348_v31  ;;  %v7392_v30 = vld [vmem:[%s9198_s1 + $0xc68] sm:$0xff]  }
 0x16e   :  { %6748 = vmatprep.subr.bf16.mxu1 %v7349_v32  ;;  %v7393_v32 = vld [vmem:[%s9198_s1 + $0xce8] sm:$0xff]  }
 0x170   :  { %6727 = vmatpush3.bf16.msra.mxu0 %v7350_v33 }
 0x171   :  { %6749 = vmatpush3.bf16.msra.mxu1 %v7351_v34  ;;  %6728 = vmatprep.subr.bf16.mxu0 %v7352_v35 }
 0x172   :  { %6750 = vmatprep.subr.bf16.mxu1 %v7353_v36  ;;  %v7394_v36 = vld [vmem:[%s9198_s1 + $0xc28] sm:$0xff]  }
 0x174   :  { %6729 = vmatpush3.bf16.msra.mxu0 %v7354_v38 }
 0x175   :  { %6751 = vmatpush3.bf16.msra.mxu1 %v7355_v40  ;;  %6730 = vmatprep.subr.bf16.mxu0 %v7356_v43  ;;  %v7398_v43 = vld [vmem:[%s9198_s1 + $0xc30] sm:$0xff]  }
 0x176   :  { %v6428_v37 = vpop.f32.mrb[16].mxu0  ;;  %6752 = vmatprep.subr.bf16.mxu1 %v7357_v46  ;;  %v7401_v46 = vld [vmem:[%s9198_s1 + $0xcf8] sm:$0xff]  }
 0x177   :  { %v6450_v39 = vpop.f32.mrb[16].mxu1  ;;  %v6429_v41 = vpop.f32.mrb[17].mxu0 }
 0x178   :  { %v6451_v42 = vpop.f32.mrb[17].mxu1  ;;  %v6430_v44 = vadd.f32 %v6429_v41, %v6428_v37  ;;  %v6431_v47 = vpop.f32.mrb[18].mxu0  ;;  %6731 = vmatpush3.bf16.msra.mxu0 %v7358_v49  ;;  %v7395_v37 = vld [vmem:[%s9198_s1 + $0xca8] sm:$0xff]   ;;  %v7396_v41 = vld [vmem:[%s9198_s1 + $0xc70] sm:$0xff]   ;;  %v39_v49 = vld [vmem:[%s9199_s0 + $0xc0] sm:$0xff] }
 0x179   :  { %v6452_v45 = vadd.f32 %v6451_v42, %v6450_v39  ;;  %v6453_v48 = vpop.f32.mrb[18].mxu1  ;;  %v6432_v52 = vpop.f32.mrb[19].mxu0  ;;  %6753 = vmatpush3.bf16.msra.mxu1 %v7359_v51  ;;  %6732 = vmatprep.subr.bf16.mxu0 %v7360_v54  ;;  %v7397_v42 = vld [vmem:[%s9198_s1 + $0xcf0] sm:$0xff]   ;;  %v7402_v47 = vld [vmem:[%s9198_s1 + $0xc38] sm:$0xff]   ;;  %v5708_v51 = vcombine.low %v39_v49, %v39_v49  ;;  %v7408_v54 = vld [vmem:[%s9198_s1 + $0xd40] sm:$0xff]  }
 0x17a   :  { %v4729_v50 = vadd.f32 %v6430_v44, %v8643_v5  ;;  %v6454_v53 = vpop.f32.mrb[19].mxu1  ;;  %6754 = vmatprep.subr.bf16.mxu1 %v7361_v56  ;;  %v7372_v5 = vld [vmem:[%s9198_s1 + $0xc40] sm:$0xff]   ;;  %v7399_v44 = vld [vmem:[%s9198_s1 + $0xcb0] sm:$0xff]   ;;  %v7403_v48 = vld [vmem:[%s9198_s1 + $0xcb8] sm:$0xff]   ;;  %v5709_v52 = vcombine.high %v39_v49, %v39_v49 }
 0x17b   :  { %v7409_v56 = vld [vmem:[%s9198_s1 + $0xdc0] sm:$0xff]   ;;  %v7452_v49 = vld [vmem:[%s9198_s1 + $0xe50] sm:$0xff]  }
 0x17c   :  { %v8748_v55 = vadd.f32 %v6452_v45, %v4729_v50  ;;  %6733 = vmatpush3.bf16.msra.mxu0 %v7362_v57  ;;  %v7400_v45 = vld [vmem:[%s9198_s1 + $0xc78] sm:$0xff]   ;;  %v40_v50 = vld [vmem:[%s9199_s0 + $0xc8] sm:$0xff]  ;;  %v7410_v57 = vld [vmem:[%s9198_s1 + $0xd00] sm:$0xff]  }
 0x17d   :  { %6755 = vmatpush3.bf16.msra.mxu1 %v7363_v58  ;;  %6734 = vmatprep.subr.bf16.mxu0 %v7364_v59  ;;  %v5710_v53 = vcombine.low %v40_v50, %v40_v50  ;;  %v7411_v58 = vld [vmem:[%s9198_s1 + $0xd80] sm:$0xff]   ;;  %v7412_v59 = vld [vmem:[%s9198_s1 + $0xd48] sm:$0xff]  }
 0x17e   :  { %6756 = vmatprep.subr.bf16.mxu1 %v7365_v60  ;;  %v7413_v60 = vld [vmem:[%s9198_s1 + $0xdc8] sm:$0xff]  }
 0x180   :  { %6735 = vmatpush3.bf16.msra.mxu0 %v7366_v61  ;;  %v7414_v61 = vld [vmem:[%s9198_s1 + $0xd08] sm:$0xff]  }
 0x181   :  { %6757 = vmatpush3.bf16.msra.mxu1 %v7367_v62  ;;  %6764 = vmatprep.subr.bf16.mxu0 %v7372_v5  ;;  %v7415_v62 = vld [vmem:[%s9198_s1 + $0xd88] sm:$0xff]   ;;  %v7422_v5 = vld [vmem:[%s9198_s1 + $0xd18] sm:$0xff]  }
 0x182   :  { %6786 = vmatprep.subr.bf16.mxu1 %v7373_v6  ;;  %v7423_v6 = vld [vmem:[%s9198_s1 + $0xd98] sm:$0xff]  }
 0x183   :  { %5287 = vmatmul.mubr.bf16.vlgmr.msra.gmra.mrb[44].mxu0 %v5704_v1  ;;  %v7418_v1 = vld [vmem:[%s9198_s1 + $0xd10] sm:$0xff]  }
 0x184   :  { %5327 = vmatmul.mubr.bf16.vlgmr.msra.gmra.mrb[44].mxu1 %v5706_v3  ;;  %6765 = vmatpush3.bf16.msra.mxu0 %v7374_v7  ;;  %v7420_v3 = vld [vmem:[%s9198_s1 + $0xd58] sm:$0xff]   ;;  %v7424_v7 = vld [vmem:[%s9198_s1 + $0xd60] sm:$0xff]  }
 0x185   :  { %6787 = vmatpush3.bf16.msra.mxu1 %v7375_v8  ;;  %6766 = vmatprep.subr.bf16.mxu0 %v7376_v9  ;;  %v7425_v8 = vld [vmem:[%s9198_s1 + $0xde0] sm:$0xff]  }
 0x186   :  { %6788 = vmatprep.subr.bf16.mxu1 %v7377_v10  ;;  %5366 = vmatprep.mubr.bf16.mxu0 %v5709_v52  ;;  %v7426_v10 = vld [vmem:[%s9198_s1 + $0xd20] sm:$0xff]   ;;  %v7455_v52 = vld [vmem:[%s9198_s1 + $0xe90] sm:$0xff]  }
 0x188   :  { %6767 = vmatpush3.bf16.msra.mxu0 %v7378_v11 }
 0x189   :  { %6789 = vmatpush3.bf16.msra.mxu1 %v7379_v12  ;;  %6768 = vmatprep.subr.bf16.mxu0 %v7380_v13  ;;  %v7427_v12 = vld [vmem:[%s9198_s1 + $0xda0] sm:$0xff]  }
 0x18a   :  { %6790 = vmatprep.subr.bf16.mxu1 %v7381_v14 }
 0x18c   :  { %6769 = vmatpush3.bf16.msra.mxu0 %v7382_v15  ;;  %v7428_v15 = vld [vmem:[%s9198_s1 + $0xd68] sm:$0xff]  }
 0x18d   :  { %6791 = vmatpush3.bf16.msra.mxu1 %v7383_v16  ;;  %6770 = vmatprep.subr.bf16.mxu0 %v7384_v17 }
 0x18e   :  { %6792 = vmatprep.subr.bf16.mxu1 %v7385_v18  ;;  %v7429_v18 = vld [vmem:[%s9198_s1 + $0xde8] sm:$0xff]  }
 0x190   :  { %6771 = vmatpush3.bf16.msra.mxu0 %v7386_v19 }
 0x191   :  { %6793 = vmatpush3.bf16.msra.mxu1 %v7387_v20  ;;  %6772 = vmatprep.subr.bf16.mxu0 %v7388_v21  ;;  %v7430_v21 = vld [vmem:[%s9198_s1 + $0xd28] sm:$0xff]  }
 0x192   :  { %6794 = vmatprep.subr.bf16.mxu1 %v7389_v22 }
 0x194   :  { %6773 = vmatpush3.bf16.msra.mxu0 %v7390_v24 }
 0x195   :  { %6795 = vmatpush3.bf16.msra.mxu1 %v7391_v26  ;;  %6774 = vmatprep.subr.bf16.mxu0 %v7392_v30  ;;  %v7432_v26 = vld [vmem:[%s9198_s1 + $0xd70] sm:$0xff]  }
 0x196   :  { %v6472_v23 = vpop.f32.mrb[20].mxu0  ;;  %6796 = vmatprep.subr.bf16.mxu1 %v7393_v32  ;;  %v7435_v30 = vld [vmem:[%s9198_s1 + $0xdb0] sm:$0xff]   ;;  %v7437_v32 = vld [vmem:[%s9198_s1 + $0xdf8] sm:$0xff]  }
 0x197   :  { %v6494_v25 = vpop.f32.mrb[20].mxu1  ;;  %v6473_v27 = vpop.f32.mrb[21].mxu0 }
 0x198   :  { %v6474_v28 = vadd.f32 %v6473_v27, %v6472_v23  ;;  %v6495_v29 = vpop.f32.mrb[21].mxu1  ;;  %v6475_v33 = vpop.f32.mrb[22].mxu0  ;;  %6775 = vmatpush3.bf16.msra.mxu0 %v7394_v36  ;;  %v7431_v23 = vld [vmem:[%s9198_s1 + $0xda8] sm:$0xff]  }
 0x199   :  { %v6496_v31 = vadd.f32 %v6495_v29, %v6494_v25  ;;  %v6497_v35 = vpop.f32.mrb[22].mxu1  ;;  %v6476_v38 = vpop.f32.mrb[23].mxu0  ;;  %6797 = vmatpush3.bf16.msra.mxu1 %v7395_v37  ;;  %6776 = vmatprep.subr.bf16.mxu0 %v7396_v41  ;;  %v7434_v29 = vld [vmem:[%s9198_s1 + $0xd30] sm:$0xff]   ;;  %v7438_v33 = vld [vmem:[%s9198_s1 + $0xd38] sm:$0xff]   ;;  %v7444_v41 = vld [vmem:[%s9198_s1 + $0xe40] sm:$0xff]  }
 0x19a   :  { %v4809_v34 = vadd.f32 %v6474_v28, %v8748_v55  ;;  %v6498_v40 = vpop.f32.mrb[23].mxu1  ;;  %6798 = vmatprep.subr.bf16.mxu1 %v7397_v42  ;;  %v5711_v55 = vcombine.high %v40_v50, %v40_v50  ;;  %v7433_v28 = vld [vmem:[%s9198_s1 + $0xdf0] sm:$0xff]   ;;  %v42_v38 = vld [vmem:[%s9199_s0 + $0xd8] sm:$0xff]  ;;  %v7445_v42 = vld [vmem:[%s9198_s1 + $0xec0] sm:$0xff]  }
 0x19b   :  { %v41_v35 = vld [vmem:[%s9199_s0 + $0xd0] sm:$0xff]  ;;  %v5715_v40 = vcombine.high %v42_v38, %v42_v38 }
 0x19c   :  { %v8850_v39 = vadd.f32 %v6496_v31, %v4809_v34  ;;  %6777 = vmatpush3.bf16.msra.mxu0 %v7398_v43  ;;  %5406 = vmatprep.mubr.bf16.mxu1 %v5711_v55  ;;  %v7436_v31 = vld [vmem:[%s9198_s1 + $0xd78] sm:$0xff]   ;;  %v5712_v36 = vcombine.low %v41_v35, %v41_v35  ;;  %v5713_v37 = vcombine.high %v41_v35, %v41_v35  ;;  %v7446_v43 = vld [vmem:[%s9198_s1 + $0xe00] sm:$0xff]   ;;  %v7453_v50 = vld [vmem:[%s9198_s1 + $0xed0] sm:$0xff]  }
 0x19d   :  { %6799 = vmatpush3.bf16.msra.mxu1 %v7399_v44  ;;  %6778 = vmatprep.subr.bf16.mxu0 %v7400_v45  ;;  %v7439_v34 = vld [vmem:[%s9198_s1 + $0xdb8] sm:$0xff]   ;;  %v7447_v44 = vld [vmem:[%s9198_s1 + $0xe80] sm:$0xff]   ;;  %v7448_v45 = vld [vmem:[%s9198_s1 + $0xe48] sm:$0xff]  }
 0x19e   :  { %6800 = vmatprep.subr.bf16.mxu1 %v7401_v46  ;;  %v7449_v46 = vld [vmem:[%s9198_s1 + $0xec8] sm:$0xff]   ;;  %v7458_v55 = vld [vmem:[%s9198_s1 + $0xe18] sm:$0xff]   ;;  %v7488_v35 = vld [vmem:[%s9198_s1 + $0xf50] sm:$0xff]  }
 0x1a0   :  { %6779 = vmatpush3.bf16.msra.mxu0 %v7402_v47  ;;  %v7450_v47 = vld [vmem:[%s9198_s1 + $0xe08] sm:$0xff]  }
 0x1a1   :  { %6801 = vmatpush3.bf16.msra.mxu1 %v7403_v48  ;;  %6808 = vmatprep.subr.bf16.mxu0 %v7408_v54  ;;  %v7451_v48 = vld [vmem:[%s9198_s1 + $0xe88] sm:$0xff]   ;;  %v7457_v54 = vld [vmem:[%s9198_s1 + $0xed8] sm:$0xff]  }
 0x1a2   :  { %6830 = vmatprep.subr.bf16.mxu1 %v7409_v56  ;;  %v7459_v56 = vld [vmem:[%s9198_s1 + $0xe98] sm:$0xff]  }
 0x1a3   :  { %5367 = vmatmul.mubr.bf16.vlgmr.msra.gmra.mrb[48].mxu0 %v5708_v51  ;;  %v7454_v51 = vld [vmem:[%s9198_s1 + $0xe10] sm:$0xff]  }
 0x1a4   :  { %5407 = vmatmul.mubr.bf16.vlgmr.msra.gmra.mrb[48].mxu1 %v5710_v53  ;;  %6809 = vmatpush3.bf16.msra.mxu0 %v7410_v57  ;;  %v7456_v53 = vld [vmem:[%s9198_s1 + $0xe58] sm:$0xff]   ;;  %v7460_v57 = vld [vmem:[%s9198_s1 + $0xe60] sm:$0xff]  }
 0x1a5   :  { %6831 = vmatpush3.bf16.msra.mxu1 %v7411_v58  ;;  %6810 = vmatprep.subr.bf16.mxu0 %v7412_v59  ;;  %v7461_v58 = vld [vmem:[%s9198_s1 + $0xee0] sm:$0xff]  }
 0x1a6   :  { %6832 = vmatprep.subr.bf16.mxu1 %v7413_v60  ;;  %5446 = vmatprep.mubr.bf16.mxu0 %v5713_v37  ;;  %v7462_v60 = vld [vmem:[%s9198_s1 + $0xe20] sm:$0xff]   ;;  %v7490_v37 = vld [vmem:[%s9198_s1 + $0xf10] sm:$0xff]  }
 0x1a7   :  { %5486 = vmatprep.mubr.bf16.mxu1 %v5715_v40  ;;  %v7493_v40 = vld [vmem:[%s9198_s1 + $0xfd8] sm:$0xff]  }
 0x1a8   :  { %6811 = vmatpush3.bf16.msra.mxu0 %v7414_v61 }
 0x1a9   :  { %6833 = vmatpush3.bf16.msra.mxu1 %v7415_v62  ;;  %6812 = vmatprep.subr.bf16.mxu0 %v7416_v63  ;;  %v7463_v62 = vld [vmem:[%s9198_s1 + $0xea0] sm:$0xff]  }
 0x1aa   :  { %6834 = vmatprep.subr.bf16.mxu1 %v7417_v0 }
 0x1ac   :  { %6813 = vmatpush3.bf16.msra.mxu0 %v7418_v1  ;;  %v7464_v1 = vld [vmem:[%s9198_s1 + $0xe68] sm:$0xff]  }
 0x1ad   :  { %6835 = vmatpush3.bf16.msra.mxu1 %v7419_v2  ;;  %6814 = vmatprep.subr.bf16.mxu0 %v7420_v3 }
 0x1ae   :  { %6836 = vmatprep.subr.bf16.mxu1 %v7421_v4  ;;  %v7465_v4 = vld [vmem:[%s9198_s1 + $0xee8] sm:$0xff]  }
 0x1b0   :  { %6815 = vmatpush3.bf16.msra.mxu0 %v7422_v5 }
 0x1b1   :  { %6837 = vmatpush3.bf16.msra.mxu1 %v7423_v6  ;;  %6816 = vmatprep.subr.bf16.mxu0 %v7424_v7  ;;  %v7466_v7 = vld [vmem:[%s9198_s1 + $0xe28] sm:$0xff]  }
 0x1b2   :  { %6838 = vmatprep.subr.bf16.mxu1 %v7425_v8 }
 0x1b4   :  { %6817 = vmatpush3.bf16.msra.mxu0 %v7426_v10 }
 0x1b5   :  { %6839 = vmatpush3.bf16.msra.mxu1 %v7427_v12  ;;  %6818 = vmatprep.subr.bf16.mxu0 %v7428_v15  ;;  %v7468_v12 = vld [vmem:[%s9198_s1 + $0xe70] sm:$0xff]  }
 0x1b6   :  { %v6516_v9 = vpop.f32.mrb[24].mxu0  ;;  %6840 = vmatprep.subr.bf16.mxu1 %v7429_v18  ;;  %v7470_v15 = vld [vmem:[%s9198_s1 + $0xe30] sm:$0xff]   ;;  %v7473_v18 = vld [vmem:[%s9198_s1 + $0xef8] sm:$0xff]  }
 0x1b7   :  { %v6538_v11 = vpop.f32.mrb[24].mxu1  ;;  %v6517_v13 = vpop.f32.mrb[25].mxu0 }
 0x1b8   :  { %v6539_v14 = vpop.f32.mrb[25].mxu1  ;;  %v6518_v16 = vadd.f32 %v6517_v13, %v6516_v9  ;;  %v6519_v19 = vpop.f32.mrb[26].mxu0  ;;  %6819 = vmatpush3.bf16.msra.mxu0 %v7430_v21  ;;  %v7467_v9 = vld [vmem:[%s9198_s1 + $0xea8] sm:$0xff]   ;;  %v43_v21 = vld [vmem:[%s9199_s0 + $0xe0] sm:$0xff] }
 0x1b9   :  { %v6540_v17 = vadd.f32 %v6539_v14, %v6538_v11  ;;  %v6541_v20 = vpop.f32.mrb[26].mxu1  ;;  %v6520_v24 = vpop.f32.mrb[27].mxu0  ;;  %6841 = vmatpush3.bf16.msra.mxu1 %v7431_v23  ;;  %6820 = vmatprep.subr.bf16.mxu0 %v7432_v26  ;;  %v7469_v14 = vld [vmem:[%s9198_s1 + $0xef0] sm:$0xff]   ;;  %v7474_v19 = vld [vmem:[%s9198_s1 + $0xe38] sm:$0xff]   ;;  %v5716_v23 = vcombine.low %v43_v21, %v43_v21 }
 0x1ba   :  { %v4889_v22 = vadd.f32 %v6518_v16, %v8850_v39  ;;  %v6542_v25 = vpop.f32.mrb[27].mxu1  ;;  %6842 = vmatprep.subr.bf16.mxu1 %v7433_v28  ;;  %v5714_v39 = vcombine.low %v42_v38, %v42_v38  ;;  %v7471_v16 = vld [vmem:[%s9198_s1 + $0xeb0] sm:$0xff]   ;;  %v7475_v20 = vld [vmem:[%s9198_s1 + $0xeb8] sm:$0xff]   ;;  %v5717_v24 = vcombine.high %v43_v21, %v43_v21  ;;  %v7481_v28 = vld [vmem:[%s9198_s1 + $0xfc0] sm:$0xff]  }
 0x1bb   :  { %v7491_v38 = vld [vmem:[%s9198_s1 + $0xf90] sm:$0xff]  }
 0x1bc   :  { %v8958_v27 = vadd.f32 %v6540_v17, %v4889_v22  ;;  %6821 = vmatpush3.bf16.msra.mxu0 %v7434_v29  ;;  %v7472_v17 = vld [vmem:[%s9198_s1 + $0xe78] sm:$0xff]   ;;  %v44_v22 = vld [vmem:[%s9199_s0 + $0xe8] sm:$0xff]  ;;  %v7482_v29 = vld [vmem:[%s9198_s1 + $0xf00] sm:$0xff]  }
 0x1bd   :  { %6843 = vmatpush3.bf16.msra.mxu1 %v7435_v30  ;;  %6822 = vmatprep.subr.bf16.mxu0 %v7436_v31  ;;  %v5718_v25 = vcombine.low %v44_v22, %v44_v22  ;;  %v5719_v26 = vcombine.high %v44_v22, %v44_v22  ;;  %v7483_v30 = vld [vmem:[%s9198_s1 + $0xf80] sm:$0xff]   ;;  %v7484_v31 = vld [vmem:[%s9198_s1 + $0xf48] sm:$0xff]  }
 0x1be   :  { %6844 = vmatprep.subr.bf16.mxu1 %v7437_v32  ;;  %v7485_v32 = vld [vmem:[%s9198_s1 + $0xfc8] sm:$0xff]  }
 0x1c0   :  { %6823 = vmatpush3.bf16.msra.mxu0 %v7438_v33  ;;  %v7486_v33 = vld [vmem:[%s9198_s1 + $0xf08] sm:$0xff]  }
 0x1c1   :  { %6845 = vmatpush3.bf16.msra.mxu1 %v7439_v34  ;;  %6852 = vmatprep.subr.bf16.mxu0 %v7444_v41  ;;  %v7487_v34 = vld [vmem:[%s9198_s1 + $0xf88] sm:$0xff]   ;;  %v7494_v41 = vld [vmem:[%s9198_s1 + $0xf18] sm:$0xff]  }
 0x1c2   :  { %6874 = vmatprep.subr.bf16.mxu1 %v7445_v42  ;;  %v7495_v42 = vld [vmem:[%s9198_s1 + $0xf98] sm:$0xff]  }
 0x1c3   :  { %5447 = vmatmul.mubr.bf16.vlgmr.msra.gmra.mrb[52].mxu0 %v5712_v36  ;;  %v7489_v36 = vld [vmem:[%s9198_s1 + $0xfd0] sm:$0xff]  }
 0x1c4   :  { %5487 = vmatmul.mubr.bf16.vlgmr.msra.gmra.mrb[52].mxu1 %v5714_v39  ;;  %6853 = vmatpush3.bf16.msra.mxu0 %v7446_v43  ;;  %v7492_v39 = vld [vmem:[%s9198_s1 + $0xf58] sm:$0xff]   ;;  %v7496_v43 = vld [vmem:[%s9198_s1 + $0xf60] sm:$0xff]  }
 0x1c5   :  { %6875 = vmatpush3.bf16.msra.mxu1 %v7447_v44  ;;  %6854 = vmatprep.subr.bf16.mxu0 %v7448_v45  ;;  %v7497_v44 = vld [vmem:[%s9198_s1 + $0xfe0] sm:$0xff]  }
 0x1c6   :  { %6876 = vmatprep.subr.bf16.mxu1 %v7449_v46  ;;  %5526 = vmatprep.mubr.bf16.mxu0 %v5717_v24  ;;  %v7498_v45 = vld [vmem:[%s9198_s1 + $0xf20] sm:$0xff]  }
 0x1c7   :  { %5566 = vmatprep.mubr.bf16.mxu1 %v5719_v26 }
 0x1c8   :  { %6855 = vmatpush3.bf16.msra.mxu0 %v7450_v47  ;;  %v7499_v47 = vld [vmem:[%s9198_s1 + $0xfa0] sm:$0xff]  }
 0x1c9   :  { %6877 = vmatpush3.bf16.msra.mxu1 %v7451_v48  ;;  %6856 = vmatprep.subr.bf16.mxu0 %v7452_v49 }
 0x1ca   :  { %6878 = vmatprep.subr.bf16.mxu1 %v7453_v50 }
 0x1cc   :  { %6857 = vmatpush3.bf16.msra.mxu0 %v7454_v51 }
 0x1cd   :  { %6879 = vmatpush3.bf16.msra.mxu1 %v7455_v52  ;;  %6858 = vmatprep.subr.bf16.mxu0 %v7456_v53  ;;  %v7500_v53 = vld [vmem:[%s9198_s1 + $0xf68] sm:$0xff]  }
 0x1ce   :  { %6880 = vmatprep.subr.bf16.mxu1 %v7457_v54 }
 0x1d0   :  { %6859 = vmatpush3.bf16.msra.mxu0 %v7458_v55  ;;  %v7501_v55 = vld [vmem:[%s9198_s1 + $0xfe8] sm:$0xff]  }
 0x1d1   :  { %6881 = vmatpush3.bf16.msra.mxu1 %v7459_v56  ;;  %6860 = vmatprep.subr.bf16.mxu0 %v7460_v57 }
 0x1d2   :  { %6882 = vmatprep.subr.bf16.mxu1 %v7461_v58  ;;  %v7502_v58 = vld [vmem:[%s9198_s1 + $0xf28] sm:$0xff]  }
 0x1d4   :  { %6861 = vmatpush3.bf16.msra.mxu0 %v7462_v60  ;;  %v7503_v60 = vld [vmem:[%s9198_s1 + $0xfa8] sm:$0xff]  }
 0x1d5   :  { %6883 = vmatpush3.bf16.msra.mxu1 %v7463_v62  ;;  %6862 = vmatprep.subr.bf16.mxu0 %v7464_v1  ;;  %v7506_v1 = vld [vmem:[%s9198_s1 + $0xf30] sm:$0xff]  }
 0x1d6   :  { %v6560_v59 = vpop.f32.mrb[28].mxu0  ;;  %6884 = vmatprep.subr.bf16.mxu1 %v7465_v4  ;;  %v7509_v4 = vld [vmem:[%s9198_s1 + $0xff8] sm:$0xff]  }
 0x1d7   :  { %v6582_v61 = vpop.f32.mrb[28].mxu1  ;;  %v6561_v63 = vpop.f32.mrb[29].mxu0 }
 0x1d8   :  { %v6583_v0 = vpop.f32.mrb[29].mxu1  ;;  %v6562_v2 = vadd.f32 %v6561_v63, %v6560_v59  ;;  %v6563_v5 = vpop.f32.mrb[30].mxu0  ;;  %6863 = vmatpush3.bf16.msra.mxu0 %v7466_v7  ;;  %v7504_v63 = vld [vmem:[%s9198_s1 + $0xf70] sm:$0xff]  }
 0x1d9   :  { %v6584_v3 = vadd.f32 %v6583_v0, %v6582_v61  ;;  %v6585_v6 = vpop.f32.mrb[30].mxu1  ;;  %v6564_v10 = vpop.f32.mrb[31].mxu0  ;;  %6885 = vmatpush3.bf16.msra.mxu1 %v7467_v9  ;;  %6864 = vmatprep.subr.bf16.mxu0 %v7468_v12  ;;  %v7505_v0 = vld [vmem:[%s9198_s1 + $0xff0] sm:$0xff]   ;;  %v7510_v5 = vld [vmem:[%s9198_s1 + $0xf38] sm:$0xff]  }
 0x1da   :  { %v4969_v8 = vadd.f32 %v6562_v2, %v8958_v27  ;;  %v6586_v11 = vpop.f32.mrb[31].mxu1  ;;  %6886 = vmatprep.subr.bf16.mxu1 %v7469_v14  ;;  %v7480_v27 = vld [vmem:[%s9198_s1 + $0xf40] sm:$0xff]   ;;  %v7507_v2 = vld [vmem:[%s9198_s1 + $0xfb0] sm:$0xff]   ;;  %v7511_v6 = vld [vmem:[%s9198_s1 + $0xfb8] sm:$0xff]  }
 0x1db   :  { %v45_v7 = vld [vmem:[%s9199_s0 + $0xf0] sm:$0xff] }
 0x1dc   :  { %v9063_v13 = vadd.f32 %v6584_v3, %v4969_v8  ;;  %6865 = vmatpush3.bf16.msra.mxu0 %v7470_v15  ;;  %v7508_v3 = vld [vmem:[%s9198_s1 + $0xf78] sm:$0xff]   ;;  %v5720_v9 = vcombine.low %v45_v7, %v45_v7  ;;  %v5721_v10 = vcombine.high %v45_v7, %v45_v7 }
 0x1dd   :  { %6887 = vmatpush3.bf16.msra.mxu1 %v7471_v16  ;;  %6866 = vmatprep.subr.bf16.mxu0 %v7472_v17  ;;  %v46_v8 = vld [vmem:[%s9199_s0 + $0xf8] sm:$0xff] }
 0x1de   :  { %6888 = vmatprep.subr.bf16.mxu1 %v7473_v18  ;;  %v5722_v11 = vcombine.low %v46_v8, %v46_v8  ;;  %v5723_v12 = vcombine.high %v46_v8, %v46_v8 }
 0x1e0   :  { %6867 = vmatpush3.bf16.msra.mxu0 %v7474_v19 }
 0x1e1   :  { %6889 = vmatpush3.bf16.msra.mxu1 %v7475_v20  ;;  %6896 = vmatprep.subr.bf16.mxu0 %v7480_v27 }
 0x1e2   :  { %6918 = vmatprep.subr.bf16.mxu1 %v7481_v28 }
 0x1e3   :  { %5527 = vmatmul.mubr.bf16.vlgmr.msra.gmra.mrb[56].mxu0 %v5716_v23 }
 0x1e4   :  { %5567 = vmatmul.mubr.bf16.vlgmr.msra.gmra.mrb[56].mxu1 %v5718_v25  ;;  %6897 = vmatpush3.bf16.msra.mxu0 %v7482_v29 }
 0x1e5   :  { %6919 = vmatpush3.bf16.msra.mxu1 %v7483_v30  ;;  %6898 = vmatprep.subr.bf16.mxu0 %v7484_v31 }
 0x1e6   :  { %6920 = vmatprep.subr.bf16.mxu1 %v7485_v32  ;;  %5606 = vmatprep.mubr.bf16.mxu0 %v5721_v10 }
 0x1e7   :  { %5646 = vmatprep.mubr.bf16.mxu1 %v5723_v12 }
 0x1e8   :  { %6899 = vmatpush3.bf16.msra.mxu0 %v7486_v33 }
 0x1e9   :  { %6921 = vmatpush3.bf16.msra.mxu1 %v7487_v34  ;;  %6900 = vmatprep.subr.bf16.mxu0 %v7488_v35 }
 0x1ea   :  { %6922 = vmatprep.subr.bf16.mxu1 %v7489_v36 }
 0x1ec   :  { %6901 = vmatpush3.bf16.msra.mxu0 %v7490_v37 }
 0x1ed   :  { %6923 = vmatpush3.bf16.msra.mxu1 %v7491_v38  ;;  %6902 = vmatprep.subr.bf16.mxu0 %v7492_v39 }
 0x1ee   :  { %6924 = vmatprep.subr.bf16.mxu1 %v7493_v40 }
 0x1f0   :  { %6903 = vmatpush3.bf16.msra.mxu0 %v7494_v41 }
 0x1f1   :  { %6925 = vmatpush3.bf16.msra.mxu1 %v7495_v42  ;;  %6904 = vmatprep.subr.bf16.mxu0 %v7496_v43 }
 0x1f2   :  { %6926 = vmatprep.subr.bf16.mxu1 %v7497_v44 }
 0x1f4   :  { %6905 = vmatpush3.bf16.msra.mxu0 %v7498_v45 }
 0x1f5   :  { %6927 = vmatpush3.bf16.msra.mxu1 %v7499_v47  ;;  %6906 = vmatprep.subr.bf16.mxu0 %v7500_v53 }
 0x1f6   :  { %v6604_v46 = vpop.f32.mrb[32].mxu0  ;;  %6928 = vmatprep.subr.bf16.mxu1 %v7501_v55 }
 0x1f7   :  { %v6626_v48 = vpop.f32.mrb[32].mxu1  ;;  %v6605_v49 = vpop.f32.mrb[33].mxu0 }
 0x1f8   :  { %v6627_v50 = vpop.f32.mrb[33].mxu1  ;;  %v6606_v51 = vadd.f32 %v6605_v49, %v6604_v46  ;;  %v6607_v54 = vpop.f32.mrb[34].mxu0  ;;  %6907 = vmatpush3.bf16.msra.mxu0 %v7502_v58 }
 0x1f9   :  { %v6628_v52 = vadd.f32 %v6627_v50, %v6626_v48  ;;  %v6629_v56 = vpop.f32.mrb[34].mxu1  ;;  %v6608_v59 = vpop.f32.mrb[35].mxu0  ;;  %6929 = vmatpush3.bf16.msra.mxu1 %v7503_v60  ;;  %6908 = vmatprep.subr.bf16.mxu0 %v7504_v63 }
 0x1fa   :  { %v5049_v57 = vadd.f32 %v6606_v51, %v9063_v13  ;;  %v6630_v61 = vpop.f32.mrb[35].mxu1  ;;  %6930 = vmatprep.subr.bf16.mxu1 %v7505_v0 }
 0x1fc   :  { %v5089_v62 = vadd.f32 %v6628_v52, %v5049_v57  ;;  %6909 = vmatpush3.bf16.msra.mxu0 %v7506_v1 }
 0x1fd   :  { %6931 = vmatpush3.bf16.msra.mxu1 %v7507_v2  ;;  %6910 = vmatprep.subr.bf16.mxu0 %v7508_v3 }
 0x1fe   :  { %6932 = vmatprep.subr.bf16.mxu1 %v7509_v4 }
 0x200   :  { %6911 = vmatpush3.bf16.msra.mxu0 %v7510_v5 }
 0x201   :  { %6933 = vmatpush3.bf16.msra.mxu1 %v7511_v6 }
 0x203   :  { %5607 = vmatmul.mubr.bf16.vlgmr.msra.gmra.mrb[60].mxu0 %v5720_v9 }
 0x204   :  { %5647 = vmatmul.mubr.bf16.vlgmr.msra.gmra.mrb[60].mxu1 %v5722_v11 }
 0x216   :  { %v6648_v13 = vpop.f32.mrb[36].mxu0 }
 0x217   :  { %v6670_v14 = vpop.f32.mrb[36].mxu1  ;;  %v6649_v15 = vpop.f32.mrb[37].mxu0 }
 0x218   :  { %v6650_v16 = vadd.f32 %v6649_v15, %v6648_v13  ;;  %v6671_v17 = vpop.f32.mrb[37].mxu1  ;;  %v6651_v18 = vpop.f32.mrb[38].mxu0 }
 0x219   :  { %v6672_v19 = vadd.f32 %v6671_v17, %v6670_v14  ;;  %v6673_v20 = vpop.f32.mrb[38].mxu1  ;;  %v6652_v21 = vpop.f32.mrb[39].mxu0 }
 0x21a   :  { %v5129_v22 = vadd.f32 %v6650_v16, %v5089_v62  ;;  %v6674_v23 = vpop.f32.mrb[39].mxu1 }
 0x21c   :  { %v5169_v24 = vadd.f32 %v6672_v19, %v5129_v22 }
 0x236   :  { %v6692_v25 = vpop.f32.mrb[40].mxu0 }
 0x237   :  { %v6714_v26 = vpop.f32.mrb[40].mxu1  ;;  %v6693_v27 = vpop.f32.mrb[41].mxu0 }
 0x238   :  { %v6715_v28 = vpop.f32.mrb[41].mxu1  ;;  %v6694_v29 = vadd.f32 %v6693_v27, %v6692_v25  ;;  %v6695_v31 = vpop.f32.mrb[42].mxu0 }
 0x239   :  { %v6716_v30 = vadd.f32 %v6715_v28, %v6714_v26  ;;  %v6717_v32 = vpop.f32.mrb[42].mxu1  ;;  %v6696_v33 = vpop.f32.mrb[43].mxu0 }
 0x23a   :  { %v6718_v34 = vpop.f32.mrb[43].mxu1  ;;  %v5209_v35 = vadd.f32 %v6694_v29, %v5169_v24 }
 0x23c   :  { %v5249_v36 = vadd.f32 %v6716_v30, %v5209_v35 }
 0x256   :  { %v6736_v37 = vpop.f32.mrb[44].mxu0 }
 0x257   :  { %v6758_v38 = vpop.f32.mrb[44].mxu1  ;;  %v6737_v39 = vpop.f32.mrb[45].mxu0 }
 0x258   :  { %v6738_v40 = vadd.f32 %v6737_v39, %v6736_v37  ;;  %v6759_v41 = vpop.f32.mrb[45].mxu1  ;;  %v6739_v42 = vpop.f32.mrb[46].mxu0 }
 0x259   :  { %v6760_v43 = vadd.f32 %v6759_v41, %v6758_v38  ;;  %v6761_v44 = vpop.f32.mrb[46].mxu1  ;;  %v6740_v45 = vpop.f32.mrb[47].mxu0 }
 0x25a   :  { %v5289_v46 = vadd.f32 %v6738_v40, %v5249_v36  ;;  %v6762_v47 = vpop.f32.mrb[47].mxu1 }
 0x25c   :  { %v5329_v48 = vadd.f32 %v6760_v43, %v5289_v46 }
 0x276   :  { %v6780_v49 = vpop.f32.mrb[48].mxu0 }
 0x277   :  { %v6802_v50 = vpop.f32.mrb[48].mxu1  ;;  %v6781_v51 = vpop.f32.mrb[49].mxu0 }
 0x278   :  { %v6782_v52 = vadd.f32 %v6781_v51, %v6780_v49  ;;  %v6803_v53 = vpop.f32.mrb[49].mxu1  ;;  %v6783_v54 = vpop.f32.mrb[50].mxu0 }
 0x279   :  { %v6804_v55 = vadd.f32 %v6803_v53, %v6802_v50  ;;  %v6805_v56 = vpop.f32.mrb[50].mxu1  ;;  %v6784_v57 = vpop.f32.mrb[51].mxu0 }
 0x27a   :  { %v5369_v58 = vadd.f32 %v6782_v52, %v5329_v48  ;;  %v6806_v59 = vpop.f32.mrb[51].mxu1 }
 0x27c   :  { %v5409_v60 = vadd.f32 %v6804_v55, %v5369_v58 }
 0x296   :  { %v6824_v61 = vpop.f32.mrb[52].mxu0 }
 0x297   :  { %v6846_v62 = vpop.f32.mrb[52].mxu1  ;;  %v6825_v63 = vpop.f32.mrb[53].mxu0 }
 0x298   :  { %v6847_v0 = vpop.f32.mrb[53].mxu1  ;;  %v6826_v1 = vadd.f32 %v6825_v63, %v6824_v61  ;;  %v6827_v3 = vpop.f32.mrb[54].mxu0 }
 0x299   :  { %v6848_v2 = vadd.f32 %v6847_v0, %v6846_v62  ;;  %v6849_v4 = vpop.f32.mrb[54].mxu1  ;;  %v6828_v5 = vpop.f32.mrb[55].mxu0 }
 0x29a   :  { %v6850_v6 = vpop.f32.mrb[55].mxu1  ;;  %v5449_v7 = vadd.f32 %v6826_v1, %v5409_v60 }
 0x29c   :  { %v5489_v8 = vadd.f32 %v6848_v2, %v5449_v7 }
 0x2b6   :  { %v6868_v9 = vpop.f32.mrb[56].mxu0 }
 0x2b7   :  { %v6890_v10 = vpop.f32.mrb[56].mxu1  ;;  %v6869_v11 = vpop.f32.mrb[57].mxu0 }
 0x2b8   :  { %v6870_v12 = vadd.f32 %v6869_v11, %v6868_v9  ;;  %v6891_v13 = vpop.f32.mrb[57].mxu1  ;;  %v6871_v14 = vpop.f32.mrb[58].mxu0 }
 0x2b9   :  { %v6892_v15 = vadd.f32 %v6891_v13, %v6890_v10  ;;  %v6893_v16 = vpop.f32.mrb[58].mxu1  ;;  %v6872_v17 = vpop.f32.mrb[59].mxu0 }
 0x2ba   :  { %v5529_v18 = vadd.f32 %v6870_v12, %v5489_v8  ;;  %v6894_v19 = vpop.f32.mrb[59].mxu1 }
 0x2bc   :  { %v5569_v20 = vadd.f32 %v6892_v15, %v5529_v18 }
 0x2d6   :  { %v6912_v21 = vpop.f32.mrb[60].mxu0 }
 0x2d7   :  { %v6934_v22 = vpop.f32.mrb[60].mxu1  ;;  %v6913_v23 = vpop.f32.mrb[61].mxu0 }
 0x2d8   :  { %v6914_v24 = vadd.f32 %v6913_v23, %v6912_v21  ;;  %v6935_v25 = vpop.f32.mrb[61].mxu1  ;;  %v6915_v26 = vpop.f32.mrb[62].mxu0 }
 0x2d9   :  { %v6936_v27 = vadd.f32 %v6935_v25, %v6934_v22  ;;  %v6937_v28 = vpop.f32.mrb[62].mxu1  ;;  %v6916_v29 = vpop.f32.mrb[63].mxu0 }
 0x2da   :  { %v5609_v30 = vadd.f32 %v6914_v24, %v5569_v20  ;;  %v6938_v31 = vpop.f32.mrb[63].mxu1 }
 0x2dc   :  { %v5649_v32 = vadd.f32 %v6936_v27, %v5609_v30 }
 0x2de   :  { %5654 = vst [vmem:[%s9201_s3] sm:$0xff] %v5649_v32 }

</bundles_post_ra>
